<compile_context>
chip_gen: v6e
topology: v6e:2x2x1
jax: 0.10.0
libtpu: 0.0.40
codegen_flags: <defaults>
</compile_context>

<pallas_src>
import functools

import numpy as np
import jax
import jax.numpy as jnp
from jax.experimental import pallas as pl
from jax.experimental.pallas import tpu as pltpu

_EPS = 1e-7  # guards 0/0 for degenerate / padded boxes (negligible vs. real unions)


def _round_up(x, m):
    return ((x + m - 1) // m) * m


def _choose_tile_n(n, mp):
    """Prefer one large query tile (best on single-TC v5e/v6e: no per-step grid
    overhead); cap the per-tile working set so huge shapes still fit scoped VMEM,
    and use an even tile count above the cap so v7x megacore balances its 2 TCs."""
    bytes_per_row = 4 * (8 + 2 * mp) * 2          # geom + gathered logits + out, double-buffered
    cap_rows = max(8, ((8 << 20) // bytes_per_row) // 8 * 8)
    if n <= cap_rows:
        return _round_up(max(n, 8), 8)
    n_tiles = _round_up(pl.cdiv(n, cap_rows), 2)  # even tile count for v7x megacore
    return _round_up(pl.cdiv(n, n_tiles), 8)


# ---------------------------------------------------------------------------
# Pallas kernel: fused cost tile  c = w_b*L1 + w_c*focal + w_g*(-GIoU)
#   pred_geom : (TILE_N, 8)  [cx, cy, w, h, x1, y1, x2, y2]  queries on sublanes
#   gt_logit  : (TILE_N, Mp) per-(query, gt) logit, gathered on the XLA side
#   gt_geom_t : (8, Mp)      coords on sublanes, gt targets on lanes (zero-padded)
#   out       : (TILE_N, Mp) cost tile (lane-dense, unmasked stores)
# ---------------------------------------------------------------------------
def _cost_kernel(pred_geom_ref, gt_logit_ref, gt_geom_t_ref, out_ref, *,
                 alpha, gamma, w_class, w_bbox, w_giou):
    # ---- focal classification cost on already-gathered per-GT logits (VPU/EUP) ----
    z = gt_logit_ref[...]                                    # (TILE_N, Mp)
    p = jax.nn.sigmoid(z)
    q = 1.0 - p
    if gamma == 2.0:                                         # default: plain square (VPU)
        p_g, q_g = p * p, q * q
    else:
        p_g = jnp.exp(gamma * jnp.log(p + 1e-12))
        q_g = jnp.exp(gamma * jnp.log(q + 1e-12))
    neg = -(1.0 - alpha) * p_g * jnp.log(q + 1e-6)
    pos = -alpha * q_g * jnp.log(p + 1e-6)
    cost = w_class * (pos - neg)                             # accumulator (TILE_N, Mp)

    # ---- box geometry (prepared on the XLA side; cheap (N,1)/(1,M) slices) ----
    pg = pred_geom_ref[...]                                  # (TILE_N, 8)
    gg = gt_geom_t_ref[...]                                  # (8, Mp)

    pcx, pcy, pw, ph = pg[:, 0:1], pg[:, 1:2], pg[:, 2:3], pg[:, 3:4]
    px1, py1, px2, py2 = pg[:, 4:5], pg[:, 5:6], pg[:, 6:7], pg[:, 7:8]
    gcx, gcy, gw, gh = gg[0:1, :], gg[1:2, :], gg[2:3, :], gg[3:4, :]
    gx1, gy1, gx2, gy2 = gg[4:5, :], gg[5:6, :], gg[6:7, :], gg[7:8, :]

    # ---- L1 (cdist p=1) on raw cxcywh ----------------------------------------
    cost = cost + w_bbox * (jnp.abs(pcx - gcx) + jnp.abs(pcy - gcy) +
                            jnp.abs(pw - gw) + jnp.abs(ph - gh))

    # ---- GIoU from narrow operands: no materialized (TILE_N, Mp) broadcasts ---
    area_p = (px2 - px1) * (py2 - py1)                       # (TILE_N, 1)
    area_g = (gx2 - gx1) * (gy2 - gy1)                       # (1, Mp)

    iw = jnp.maximum(jnp.minimum(px2, gx2) - jnp.maximum(px1, gx1), 0.0)
    ih = jnp.maximum(jnp.minimum(py2, gy2) - jnp.maximum(py1, gy1), 0.0)
    ew = jnp.maximum(px2, gx2) - jnp.minimum(px1, gx1)
    eh = jnp.maximum(py2, gy2) - jnp.minimum(py1, gy1)

    inter = iw * ih
    union = (area_p + area_g) - inter
    iou = inter * pl.reciprocal(union + _EPS, approx=True)   # EUP vrcp, ~free slot
    enclose = ew * eh
    giou = iou - (enclose - union) * pl.reciprocal(enclose + _EPS, approx=True)

    cost = cost - w_giou * giou                              # cost_giou = -giou
    out_ref[...] = cost.astype(out_ref.dtype)


# ---------------------------------------------------------------------------
# Wrapper: batched, padded cost matrices in a single pallas_call
# ---------------------------------------------------------------------------
def _to_geom(b):  # (K,4) cxcywh -> (K,8) [cx,cy,w,h,x1,y1,x2,y2]
    cx, cy, w, h = b[:, 0], b[:, 1], b[:, 2], b[:, 3]
    return jnp.stack([cx, cy, w, h,
                      cx - 0.5 * w, cy - 0.5 * h,
                      cx + 0.5 * w, cy + 0.5 * h], axis=-1)


def _cost_matrices_padded(pred_boxes_list, pred_logits_list,
                          gt_boxes_list, gt_labels_list, *,
                          cost_class=1.0, cost_bbox=1.0, cost_giou=1.0,
                          focal_alpha=0.25, focal_gamma=2.0):
    B = len(pred_boxes_list)
    N = int(pred_boxes_list[0].shape[0])
    assert all(int(p.shape[0]) == N for p in pred_boxes_list), "all images must share num_queries"
    Ms = [int(g.shape[0]) for g in gt_boxes_list]

    # lane-dense M padding; sublane-aligned query tiles
    Mp = _round_up(max(max(Ms), 1), 128)
    TILE_N = _choose_tile_n(N, Mp)
    Np = _round_up(N, TILE_N)
    n_tiles = Np // TILE_N

    # --- wrapper-side prep: geometry + per-GT logit gather (pure layout plumbing) ---
    pg_b, zl_b, gg_b = [], [], []
    for pboxes, plogits, gboxes, glabels in zip(pred_boxes_list, pred_logits_list,
                                                gt_boxes_list, gt_labels_list):
        M = int(gboxes.shape[0])
        pred_geom = _to_geom(pboxes.astype(jnp.float32))                 # (N, 8)
        gt_geom_t = _to_geom(gboxes.astype(jnp.float32)).T               # (8, M)
        if M > 0:
            gathered = jnp.take(plogits.astype(jnp.float32), glabels, axis=1)  # (N, M)
        else:
            gathered = jnp.zeros((N, 0), jnp.float32)
        pg_b.append(jnp.pad(pred_geom, ((0, Np - N), (0, 0))))
        zl_b.append(jnp.pad(gathered, ((0, Np - N), (0, Mp - M))))
        gg_b.append(jnp.pad(gt_geom_t, ((0, 0), (0, Mp - M))))

    pred_geom = jnp.stack(pg_b)      # (B, Np, 8)
    gt_logit = jnp.stack(zl_b)       # (B, Np, Mp)
    gt_geom_t = jnp.stack(gg_b)      # (B, 8, Mp)

    kernel = functools.partial(
        _cost_kernel, alpha=float(focal_alpha), gamma=float(focal_gamma),
        w_class=float(cost_class), w_bbox=float(cost_bbox), w_giou=float(cost_giou))

    # explicit VMEM budget with headroom (safe on v5e/v6e/v7x scoped limits)
    tile_bytes = 4 * (TILE_N * (8 + 2 * Mp) + 8 * Mp)
    vmem_limit = int(min(max(6 * tile_bytes, 16 << 20), 48 << 20))

    cost_est = pl.CostEstimate(
        flops=int(45 * B * Np * Mp),
        transcendentals=int(6 * B * Np * Mp),
        bytes_accessed=int(4 * B * (Np * 8 + 2 * Np * Mp + 8 * Mp)))

    c_padded = pl.pallas_call(
        kernel,
        out_shape=jax.ShapeDtypeStruct((B, Np, Mp), jnp.float32),
        grid=(B, n_tiles),
        in_specs=[
            pl.BlockSpec((None, TILE_N, 8), lambda b, i: (b, i, 0)),    # pred geometry tile
            pl.BlockSpec((None, TILE_N, Mp), lambda b, i: (b, i, 0)),   # gathered per-GT logits
            pl.BlockSpec((None, 8, Mp), lambda b, i: (b, 0, 0)),        # gt geometry (tiny, resident per image)
        ],
        out_specs=pl.BlockSpec((None, TILE_N, Mp), lambda b, i: (b, i, 0)),
        compiler_params=pltpu.CompilerParams(
            dimension_semantics=("parallel", "parallel"),
            vmem_limit_bytes=vmem_limit),
        cost_estimate=cost_est,
    )(pred_geom, gt_logit, gt_geom_t)

    return c_padded, Ms, N


def compute_cost_matrix(pred_boxes, pred_logits, gt_boxes, gt_labels, *,
                        cost_class=1.0, cost_bbox=1.0, cost_giou=1.0,
                        focal_alpha=0.25, focal_gamma=2.0):
    """Single-image (N, M) cost matrix (device array)."""
    c_pad, Ms, N = _cost_matrices_padded(
        [pred_boxes], [pred_logits], [gt_boxes], [gt_labels],
        cost_class=cost_class, cost_bbox=cost_bbox, cost_giou=cost_giou,
        focal_alpha=focal_alpha, focal_gamma=focal_gamma)
    return c_pad[0, :N, :Ms[0]]


# ---------------------------------------------------------------------------
# Host-side Hungarian assignment (scipy if available, numpy fallback)
# ---------------------------------------------------------------------------
# TODO(synk): linear_sum_assignment is an inherently sequential host algorithm;
# only the O(B*N*M) cost tensor is computed on TPU.
try:
    from scipy.optimize import linear_sum_assignment as _scipy_lsa
except Exception:  # pragma: no cover
    _scipy_lsa = None


def _linear_sum_assignment_np(cost):
    cost = np.asarray(cost, dtype=np.float64)
    n, m = cost.shape
    transposed = n > m
    if transposed:
        cost = cost.T
        n, m = m, n
    INF = float("inf")
    u = np.zeros(n + 1)
    v = np.zeros(m + 1)
    p = np.zeros(m + 1, dtype=np.int64)
    way = np.zeros(m + 1, dtype=np.int64)
    for i in range(1, n + 1):
        p[0] = i
        j0 = 0
        minv = np.full(m + 1, INF)
        used = np.zeros(m + 1, dtype=bool)
        while True:
            used[j0] = True
            i0 = p[j0]
            delta, j1 = INF, -1
            for j in range(1, m + 1):
                if not used[j]:
                    cur = cost[i0 - 1, j - 1] - u[i0] - v[j]
                    if cur < minv[j]:
                        minv[j] = cur
                        way[j] = j0
                    if minv[j] < delta:
                        delta, j1 = minv[j], j
            for j in range(m + 1):
                if used[j]:
                    u[p[j]] += delta
                    v[j] -= delta
                else:
                    minv[j] -= delta
            j0 = j1
            if p[j0] == 0:
                break
        while True:
            j1 = way[j0]
            p[j0] = p[j1]
            j0 = j1
            if j0 == 0:
                break
    rows, cols = [], []
    for j in range(1, m + 1):
        if p[j] != 0:
            rows.append(p[j] - 1)
            cols.append(j - 1)
    rows = np.asarray(rows, np.int64)
    cols = np.asarray(cols, np.int64)
    if transposed:
        rows, cols = cols, rows
    order = np.argsort(rows)
    return rows[order], cols[order]


def linear_sum_assignment_host(cost):
    if _scipy_lsa is not None:
        r, c = _scipy_lsa(np.asarray(cost))
        return np.asarray(r, np.int64), np.asarray(c, np.int64)
    return _linear_sum_assignment_np(cost)


class HungarianMatcher:
    def __init__(self, cost_class=1.0, cost_bbox=1.0, cost_giou=1.0,
                 focal_alpha=0.25, focal_gamma=2.0, mixed_match=False):
        assert cost_class != 0 or cost_bbox != 0 or cost_giou != 0
        self.cost_class = cost_class
        self.cost_bbox = cost_bbox
        self.cost_giou = cost_giou
        self.focal_alpha = focal_alpha
        self.focal_gamma = focal_gamma
        self.mixed_match = mixed_match

    # --- cost matrices ------------------------------------------------------
    def calculate_cost(self, pred_boxes, pred_logits, gt_boxes, gt_labels):
        return compute_cost_matrix(
            pred_boxes, pred_logits, gt_boxes, gt_labels,
            cost_class=self.cost_class, cost_bbox=self.cost_bbox,
            cost_giou=self.cost_giou, focal_alpha=self.focal_alpha,
            focal_gamma=self.focal_gamma)

    # --- host LAP solve -------------------------------------------------------
    def _solve(self, c_host, gt_copy):
        if not self.mixed_match:
            src, tgt = linear_sum_assignment_host(c_host)
            return jnp.asarray(src), jnp.asarray(tgt)
        gt_size = c_host.shape[-1]
        num_queries = c_host.shape[0]
        if gt_size > 0:
            gt_copy = min(int(num_queries * 0.5 / gt_size), gt_copy)
        gt_copy = max(int(gt_copy), 1)  # guard the degenerate 0-copy case (empty assignment)
        src, tgt = linear_sum_assignment_host(np.tile(c_host, (1, gt_copy)))
        tgt = tgt % max(gt_size, 1)
        order = np.argsort(tgt, kind="stable")
        return jnp.asarray(src[order]), jnp.asarray(tgt[order])

    # --- single image (original module signature) ----------------------------
    def forward(self, pred_boxes, pred_logits, gt_boxes, gt_labels, gt_copy=1):
        return self.forward_batch([pred_boxes], [pred_logits], [gt_boxes], [gt_labels],
                                  gt_copy=gt_copy)[0]

    # --- whole batch: one pallas_call + one device->host transfer -------------
    def forward_batch(self, pred_boxes_list, pred_logits_list,
                      gt_boxes_list, gt_labels_list, gt_copy=1):
        c_pad, Ms, N = _cost_matrices_padded(
            pred_boxes_list, pred_logits_list, gt_boxes_list, gt_labels_list,
            cost_class=self.cost_class, cost_bbox=self.cost_bbox,
            cost_giou=self.cost_giou, focal_alpha=self.focal_alpha,
            focal_gamma=self.focal_gamma)
        c_host = np.asarray(jax.device_get(c_pad))   # single D2H transfer for the batch
        return [self._solve(c_host[b, :N, :M], gt_copy) for b, M in enumerate(Ms)]

    __call__ = forward


# ---------------------------------------------------------------------------
# Pure-JAX reference for the cost matrix (correctness check)
# ---------------------------------------------------------------------------
def _cost_ref(pred_boxes, pred_logits, gt_boxes, gt_labels,
              alpha=0.25, gamma=2.0):
    p = jax.nn.sigmoid(pred_logits)
    neg = -(1 - alpha) * (p ** gamma) * jnp.log(1 - p + 1e-6)
    pos = -alpha * ((1 - p) ** gamma) * jnp.log(p + 1e-6)
    cost_class = pos[:, gt_labels] - neg[:, gt_labels]
    cost_bbox = jnp.sum(jnp.abs(pred_boxes[:, None, :] - gt_boxes[None, :, :]), -1)

    def to_xyxy(b):
        cx, cy, w, h = b[..., 0], b[..., 1], b[..., 2], b[..., 3]
        return jnp.stack([cx - 0.5 * w, cy - 0.5 * h, cx + 0.5 * w, cy + 0.5 * h], -1)

    pb, gb = to_xyxy(pred_boxes), to_xyxy(gt_boxes)
    area_p = (pb[:, 2] - pb[:, 0]) * (pb[:, 3] - pb[:, 1])
    area_g = (gb[:, 2] - gb[:, 0]) * (gb[:, 3] - gb[:, 1])
    lt = jnp.maximum(pb[:, None, :2], gb[None, :, :2])
    rb = jnp.minimum(pb[:, None, 2:], gb[None, :, 2:])
    wh = jnp.clip(rb - lt, 0)
    inter = wh[..., 0] * wh[..., 1]
    union = area_p[:, None] + area_g[None, :] - inter
    iou = inter / union
    lt_e = jnp.minimum(pb[:, None, :2], gb[None, :, :2])
    rb_e = jnp.maximum(pb[:, None, 2:], gb[None, :, 2:])
    wh_e = rb_e - lt_e
    enclose = wh_e[..., 0] * wh_e[..., 1]
    giou = iou - (enclose - union) / enclose
    return cost_bbox + cost_class + (-giou)


if __name__ == "__main__":
    key = jax.random.PRNGKey(0)

    # Small DETR-like shapes; two images with different GT counts exercise the
    # batched grid=(B, tiles) path plus lane/sublane padding (M -> 128, N -> mult of 8).
    B, num_queries, num_classes = 2, 96, 32
    gt_counts = [7, 5]

    pred_boxes_list, pred_logits_list = [], []
    gt_boxes_list, gt_labels_list = [], []
    for b in range(B):
        k1, k2, k3, k4, key = jax.random.split(key, 5)
        logits = jax.random.normal(k1, (num_queries, num_classes), jnp.float32)
        p_cxcy = jax.random.uniform(k2, (num_queries, 2), minval=0.1, maxval=0.9)
        p_wh = jax.random.uniform(k2, (num_queries, 2), minval=0.05, maxval=0.3)
        pboxes = jnp.concatenate([p_cxcy, p_wh], axis=-1)
        g_cxcy = jax.random.uniform(k3, (gt_counts[b], 2), minval=0.1, maxval=0.9)
        g_wh = jax.random.uniform(k3, (gt_counts[b], 2), minval=0.05, maxval=0.3)
        gboxes = jnp.concatenate([g_cxcy, g_wh], axis=-1)
        glabels = jax.random.randint(k4, (gt_counts[b],), 0, num_classes)
        pred_logits_list.append(logits)
        pred_boxes_list.append(pboxes)
        gt_boxes_list.append(gboxes)
        gt_labels_list.append(glabels)

    matcher = HungarianMatcher()

    # Kernel cost matrices vs pure-JAX reference (approx reciprocal -> loose tolerance)
    for b in range(B):
        c_kernel = matcher.calculate_cost(pred_boxes_list[b], pred_logits_list[b],
                                          gt_boxes_list[b], gt_labels_list[b])
        jax.block_until_ready(c_kernel)
        c_ref = _cost_ref(pred_boxes_list[b], pred_logits_list[b],
                          gt_boxes_list[b], gt_labels_list[b])
        np.testing.assert_allclose(np.asarray(c_kernel), np.asarray(c_ref),
                                   rtol=1e-2, atol=1e-2)

    # Batched matcher: one pallas_call + one D2H transfer for the whole batch
    batched = matcher.forward_batch(pred_boxes_list, pred_logits_list,
                                    gt_boxes_list, gt_labels_list)
    for (src_ind, tgt_ind), M in zip(batched, gt_counts):
        assert src_ind.shape == (M,) and tgt_ind.shape == (M,)

    # Single-image forward keeps the original module signature
    src_ind, tgt_ind = matcher(pred_boxes_list[0], pred_logits_list[0],
                               gt_boxes_list[0], gt_labels_list[0])
    jax.block_until_ready((src_ind, tgt_ind))
    assert src_ind.shape == (gt_counts[0],) and tgt_ind.shape == (gt_counts[0],)

    print("KERNEL_OK")
</pallas_src>

<mosaic_0001>
module attributes {stable_mosaic.version = 11 : i64} {
  func.func @_cost_kernel(%arg0: i32, %arg1: i32, %arg2: memref<1x96x8xf32, #tpu.memory_space<vmem>>, %arg3: memref<1x96x128xf32, #tpu.memory_space<vmem>>, %arg4: memref<1x8x128xf32, #tpu.memory_space<vmem>>, %arg5: memref<1x96x128xf32, #tpu.memory_space<vmem>>) attributes {dimension_semantics = [#tpu.dimension_semantics<parallel>, #tpu.dimension_semantics<parallel>], iteration_bounds = array<i64: 1, 1>, scalar_prefetch = 0 : i64, scratch_operands = 0 : i64, tpu.core_type = #tpu.core_type<tc>, window_params = [{transform_indices = @transform_0, window_bounds = array<i64: 1, 96, 8>}, {transform_indices = @transform_1, window_bounds = array<i64: 1, 96, 128>}, {transform_indices = @transform_2, window_bounds = array<i64: 1, 8, 128>}, {transform_indices = @transform_3, window_bounds = array<i64: 1, 96, 128>}]} {
    %c0 = arith.constant 0 : index
    %c0_0 = arith.constant 0 : index
    %c0_1 = arith.constant 0 : index
    %0 = vector.load %arg3[%c0, %c0_0, %c0_1] : memref<1x96x128xf32, #tpu.memory_space<vmem>>, vector<1x96x128xf32>
    %1 = vector.shape_cast %0 : vector<1x96x128xf32> to vector<96x128xf32>
    %2 = arith.negf %1 : vector<96x128xf32>
    %3 = math.exp %2 : vector<96x128xf32>
    %cst = arith.constant 1.000000e+00 : f32
    %4 = vector.broadcast %cst : f32 to vector<96x128xf32>
    %5 = arith.addf %4, %3 : vector<96x128xf32>
    %6 = arith.divf %4, %5 : vector<96x128xf32>
    %cst_2 = arith.constant 1.000000e+00 : f32
    %7 = vector.broadcast %cst_2 : f32 to vector<96x128xf32>
    %8 = arith.subf %7, %6 : vector<96x128xf32>
    %9 = arith.mulf %6, %6 : vector<96x128xf32>
    %10 = arith.mulf %8, %8 : vector<96x128xf32>
    %cst_3 = arith.constant -7.500000e-01 : f32
    %11 = vector.broadcast %cst_3 : f32 to vector<96x128xf32>
    %12 = arith.mulf %11, %9 : vector<96x128xf32>
    %cst_4 = arith.constant 9.99999997E-7 : f32
    %13 = vector.broadcast %cst_4 : f32 to vector<96x128xf32>
    %14 = arith.addf %8, %13 : vector<96x128xf32>
    %15 = math.log %14 : vector<96x128xf32>
    %16 = arith.mulf %12, %15 : vector<96x128xf32>
    %cst_5 = arith.constant -2.500000e-01 : f32
    %17 = vector.broadcast %cst_5 : f32 to vector<96x128xf32>
    %18 = arith.mulf %17, %10 : vector<96x128xf32>
    %cst_6 = arith.constant 9.99999997E-7 : f32
    %19 = vector.broadcast %cst_6 : f32 to vector<96x128xf32>
    %20 = arith.addf %6, %19 : vector<96x128xf32>
    %21 = math.log %20 : vector<96x128xf32>
    %22 = arith.mulf %18, %21 : vector<96x128xf32>
    %23 = arith.subf %22, %16 : vector<96x128xf32>
    %cst_7 = arith.constant 1.000000e+00 : f32
    %24 = vector.broadcast %cst_7 : f32 to vector<96x128xf32>
    %25 = arith.mulf %24, %23 : vector<96x128xf32>
    %c0_8 = arith.constant 0 : index
    %c0_9 = arith.constant 0 : index
    %c0_10 = arith.constant 0 : index
    %26 = vector.load %arg2[%c0_8, %c0_9, %c0_10] : memref<1x96x8xf32, #tpu.memory_space<vmem>>, vector<1x96x8xf32>
    %27 = vector.shape_cast %26 : vector<1x96x8xf32> to vector<96x8xf32>
    %c0_11 = arith.constant 0 : index
    %c0_12 = arith.constant 0 : index
    %c0_13 = arith.constant 0 : index
    %28 = vector.load %arg4[%c0_11, %c0_12, %c0_13] : memref<1x8x128xf32, #tpu.memory_space<vmem>>, vector<1x8x128xf32>
    %29 = vector.shape_cast %28 : vector<1x8x128xf32> to vector<8x128xf32>
    %30 = vector.extract_strided_slice %27 {offsets = [0, 0], sizes = [96, 1], strides = [1, 1]} : vector<96x8xf32> to vector<96x1xf32>
    %31 = vector.extract_strided_slice %27 {offsets = [0, 1], sizes = [96, 1], strides = [1, 1]} : vector<96x8xf32> to vector<96x1xf32>
    %32 = vector.extract_strided_slice %27 {offsets = [0, 2], sizes = [96, 1], strides = [1, 1]} : vector<96x8xf32> to vector<96x1xf32>
    %33 = vector.extract_strided_slice %27 {offsets = [0, 3], sizes = [96, 1], strides = [1, 1]} : vector<96x8xf32> to vector<96x1xf32>
    %34 = vector.extract_strided_slice %27 {offsets = [0, 4], sizes = [96, 1], strides = [1, 1]} : vector<96x8xf32> to vector<96x1xf32>
    %35 = vector.extract_strided_slice %27 {offsets = [0, 5], sizes = [96, 1], strides = [1, 1]} : vector<96x8xf32> to vector<96x1xf32>
    %36 = vector.extract_strided_slice %27 {offsets = [0, 6], sizes = [96, 1], strides = [1, 1]} : vector<96x8xf32> to vector<96x1xf32>
    %37 = vector.extract_strided_slice %27 {offsets = [0, 7], sizes = [96, 1], strides = [1, 1]} : vector<96x8xf32> to vector<96x1xf32>
    %38 = vector.extract_strided_slice %29 {offsets = [0, 0], sizes = [1, 128], strides = [1, 1]} : vector<8x128xf32> to vector<1x128xf32>
    %39 = vector.extract_strided_slice %29 {offsets = [1, 0], sizes = [1, 128], strides = [1, 1]} : vector<8x128xf32> to vector<1x128xf32>
    %40 = vector.extract_strided_slice %29 {offsets = [2, 0], sizes = [1, 128], strides = [1, 1]} : vector<8x128xf32> to vector<1x128xf32>
    %41 = vector.extract_strided_slice %29 {offsets = [3, 0], sizes = [1, 128], strides = [1, 1]} : vector<8x128xf32> to vector<1x128xf32>
    %42 = vector.extract_strided_slice %29 {offsets = [4, 0], sizes = [1, 128], strides = [1, 1]} : vector<8x128xf32> to vector<1x128xf32>
    %43 = vector.extract_strided_slice %29 {offsets = [5, 0], sizes = [1, 128], strides = [1, 1]} : vector<8x128xf32> to vector<1x128xf32>
    %44 = vector.extract_strided_slice %29 {offsets = [6, 0], sizes = [1, 128], strides = [1, 1]} : vector<8x128xf32> to vector<1x128xf32>
    %45 = vector.extract_strided_slice %29 {offsets = [7, 0], sizes = [1, 128], strides = [1, 1]} : vector<8x128xf32> to vector<1x128xf32>
    %46 = vector.broadcast %30 : vector<96x1xf32> to vector<96x128xf32>
    %47 = vector.broadcast %38 : vector<1x128xf32> to vector<96x128xf32>
    %48 = arith.subf %46, %47 : vector<96x128xf32>
    %49 = math.absf %48 : vector<96x128xf32>
    %50 = vector.broadcast %31 : vector<96x1xf32> to vector<96x128xf32>
    %51 = vector.broadcast %39 : vector<1x128xf32> to vector<96x128xf32>
    %52 = arith.subf %50, %51 : vector<96x128xf32>
    %53 = math.absf %52 : vector<96x128xf32>
    %54 = arith.addf %49, %53 : vector<96x128xf32>
    %55 = vector.broadcast %32 : vector<96x1xf32> to vector<96x128xf32>
    %56 = vector.broadcast %40 : vector<1x128xf32> to vector<96x128xf32>
    %57 = arith.subf %55, %56 : vector<96x128xf32>
    %58 = math.absf %57 : vector<96x128xf32>
    %59 = arith.addf %54, %58 : vector<96x128xf32>
    %60 = vector.broadcast %33 : vector<96x1xf32> to vector<96x128xf32>
    %61 = vector.broadcast %41 : vector<1x128xf32> to vector<96x128xf32>
    %62 = arith.subf %60, %61 : vector<96x128xf32>
    %63 = math.absf %62 : vector<96x128xf32>
    %64 = arith.addf %59, %63 : vector<96x128xf32>
    %cst_14 = arith.constant 1.000000e+00 : f32
    %65 = vector.broadcast %cst_14 : f32 to vector<96x128xf32>
    %66 = arith.mulf %65, %64 : vector<96x128xf32>
    %67 = arith.addf %25, %66 : vector<96x128xf32>
    %68 = arith.subf %36, %34 : vector<96x1xf32>
    %69 = arith.subf %37, %35 : vector<96x1xf32>
    %70 = arith.mulf %68, %69 : vector<96x1xf32>
    %71 = arith.subf %44, %42 : vector<1x128xf32>
    %72 = arith.subf %45, %43 : vector<1x128xf32>
    %73 = arith.mulf %71, %72 : vector<1x128xf32>
    %74 = vector.broadcast %36 : vector<96x1xf32> to vector<96x128xf32>
    %75 = vector.broadcast %44 : vector<1x128xf32> to vector<96x128xf32>
    %76 = arith.minimumf %74, %75 : vector<96x128xf32>
    %77 = vector.broadcast %34 : vector<96x1xf32> to vector<96x128xf32>
    %78 = vector.broadcast %42 : vector<1x128xf32> to vector<96x128xf32>
    %79 = arith.maximumf %77, %78 : vector<96x128xf32>
    %80 = arith.subf %76, %79 : vector<96x128xf32>
    %cst_15 = arith.constant 0.000000e+00 : f32
    %81 = vector.broadcast %cst_15 : f32 to vector<96x128xf32>
    %82 = arith.maximumf %80, %81 : vector<96x128xf32>
    %83 = vector.broadcast %37 : vector<96x1xf32> to vector<96x128xf32>
    %84 = vector.broadcast %45 : vector<1x128xf32> to vector<96x128xf32>
    %85 = arith.minimumf %83, %84 : vector<96x128xf32>
    %86 = vector.broadcast %35 : vector<96x1xf32> to vector<96x128xf32>
    %87 = vector.broadcast %43 : vector<1x128xf32> to vector<96x128xf32>
    %88 = arith.maximumf %86, %87 : vector<96x128xf32>
    %89 = arith.subf %85, %88 : vector<96x128xf32>
    %cst_16 = arith.constant 0.000000e+00 : f32
    %90 = vector.broadcast %cst_16 : f32 to vector<96x128xf32>
    %91 = arith.maximumf %89, %90 : vector<96x128xf32>
    %92 = vector.broadcast %36 : vector<96x1xf32> to vector<96x128xf32>
    %93 = vector.broadcast %44 : vector<1x128xf32> to vector<96x128xf32>
    %94 = arith.maximumf %92, %93 : vector<96x128xf32>
    %95 = vector.broadcast %34 : vector<96x1xf32> to vector<96x128xf32>
    %96 = vector.broadcast %42 : vector<1x128xf32> to vector<96x128xf32>
    %97 = arith.minimumf %95, %96 : vector<96x128xf32>
    %98 = arith.subf %94, %97 : vector<96x128xf32>
    %99 = vector.broadcast %37 : vector<96x1xf32> to vector<96x128xf32>
    %100 = vector.broadcast %45 : vector<1x128xf32> to vector<96x128xf32>
    %101 = arith.maximumf %99, %100 : vector<96x128xf32>
    %102 = vector.broadcast %35 : vector<96x1xf32> to vector<96x128xf32>
    %103 = vector.broadcast %43 : vector<1x128xf32> to vector<96x128xf32>
    %104 = arith.minimumf %102, %103 : vector<96x128xf32>
    %105 = arith.subf %101, %104 : vector<96x128xf32>
    %106 = arith.mulf %82, %91 : vector<96x128xf32>
    %107 = vector.broadcast %70 : vector<96x1xf32> to vector<96x128xf32>
    %108 = vector.broadcast %73 : vector<1x128xf32> to vector<96x128xf32>
    %109 = arith.addf %107, %108 : vector<96x128xf32>
    %110 = arith.subf %109, %106 : vector<96x128xf32>
    %cst_17 = arith.constant 1.000000e-07 : f32
    %111 = vector.broadcast %cst_17 : f32 to vector<96x128xf32>
    %112 = arith.addf %110, %111 : vector<96x128xf32>
    %113 = tpu.reciprocal %112 {approx = true} : vector<96x128xf32> -> vector<96x128xf32>
    %114 = arith.mulf %106, %113 : vector<96x128xf32>
    %115 = arith.mulf %98, %105 : vector<96x128xf32>
    %116 = arith.subf %115, %110 : vector<96x128xf32>
    %cst_18 = arith.constant 1.000000e-07 : f32
    %117 = vector.broadcast %cst_18 : f32 to vector<96x128xf32>
    %118 = arith.addf %115, %117 : vector<96x128xf32>
    %119 = tpu.reciprocal %118 {approx = true} : vector<96x128xf32> -> vector<96x128xf32>
    %120 = arith.mulf %116, %119 : vector<96x128xf32>
    %121 = arith.subf %114, %120 : vector<96x128xf32>
    %cst_19 = arith.constant 1.000000e+00 : f32
    %122 = vector.broadcast %cst_19 : f32 to vector<96x128xf32>
    %123 = arith.mulf %122, %121 : vector<96x128xf32>
    %124 = arith.subf %67, %123 : vector<96x128xf32>
    %c0_20 = arith.constant 0 : index
    %c0_21 = arith.constant 0 : index
    %c0_22 = arith.constant 0 : index
    %125 = vector.load %arg5[%c0_20, %c0_21, %c0_22] : memref<1x96x128xf32, #tpu.memory_space<vmem>>, vector<1x96x128xf32>
    %126 = vector.shape_cast %125 : vector<1x96x128xf32> to vector<96x128xf32>
    %127 = vector.shape_cast %124 : vector<96x128xf32> to vector<1x96x128xf32>
    tpu.vector_store %arg5[%c0_20, %c0_21, %c0_22], %127 {strides = array<i32>} : memref<1x96x128xf32, #tpu.memory_space<vmem>>, vector<1x96x128xf32>,
    return
  }
  func.func @transform_0(%arg0: i32, %arg1: i32) -> (i32, i32, i32) {
    %c0_i32 = arith.constant 0 : i32
    %c0_i32_0 = arith.constant 0 : i32
    return %arg0, %arg1, %c0_i32 : i32, i32, i32
  }
  func.func @transform_1(%arg0: i32, %arg1: i32) -> (i32, i32, i32) {
    %c0_i32 = arith.constant 0 : i32
    %c0_i32_0 = arith.constant 0 : i32
    return %arg0, %arg1, %c0_i32 : i32, i32, i32
  }
  func.func @transform_2(%arg0: i32, %arg1: i32) -> (i32, i32, i32) {
    %c0_i32 = arith.constant 0 : i32
    %c0_i32_0 = arith.constant 0 : i32
    %c0_i32_1 = arith.constant 0 : i32
    return %arg0, %c0_i32, %c0_i32_0 : i32, i32, i32
  }
  func.func @transform_3(%arg0: i32, %arg1: i32) -> (i32, i32, i32) {
    %c0_i32 = arith.constant 0 : i32
    %c0_i32_0 = arith.constant 0 : i32
    return %arg0, %arg1, %c0_i32 : i32, i32, i32
  }
}

</mosaic_0001>

<bundles_post_ra>
// kernel: tpu_custom_call.1
= control target key start
LH: loop header
LB: loop body
LE: loop exit
PB: predicated region body
PF: predicated region fallthrough
CT: control target
= control target key end

     0   :  { %v1593_v2 = vmov 0   ;;  %s2915_s0 = inlined_call_operand.vmem [shape: f32[1,96,8], index: 0, kind: input, shape index: {}]   ;;  %s2916_s1 = inlined_call_operand.vmem [shape: f32[1,96,128], index: 1, kind: input, shape index: {}]   ;;  %s2917_s2 = inlined_call_operand.vmem [shape: f32[1,8,128], index: 2, kind: input, shape index: {}]   ;;  %s2918_s3 = inlined_call_operand.hbm [shape: f32[1,96,128], index: 3, kind: output, shape index: {}]  }
   0x1   :  { %v1629_v0 = vld [vmem:[%s2915_s0 + $0x10] sm:$0xff]  ;;  %v1634_v1 = vld [vmem:[%s2915_s0] sm:$0xff]  ;;  %1410 = vset.pattern.permute.xlu1 %v1593_v2  ;;  %1409 = vset.pattern.permute.xlu0 %v1593_v2  ;;  %v1641_v3 = vld [vmem:[%s2915_s0 + $0x18] sm:$0xff] }
   0x2   :  { %292 = vperm.xlu1 %1410, %v1629_v0   ;;  %282 = vperm.xlu0 %1409, %v1634_v1   ;;  %v1646_v4 = vld [vmem:[%s2915_s0 + $0x8] sm:$0xff] }
   0x3   :  { %8 = vsyncpa [#allocation3], 0  ;;  %v1653_v5 = vld [vmem:[%s2915_s0 + $0x28] sm:$0xff]  ;;  %v1658_v6 = vld [vmem:[%s2915_s0 + $0x20] sm:$0xff]  ;;  %v1594_v13 = vmov 1   ;;  %v1595_v14 = vmov 2   ;;  %v340_v52 = vlaneseq }
   0x4   :  { %v1665_v7 = vld [vmem:[%s2915_s0 + $0x38] sm:$0xff]  ;;  %v1670_v8 = vld [vmem:[%s2915_s0 + $0x30] sm:$0xff]  ;;  %v1677_v9 = vld [vmem:[%s2915_s0 + $0x48] sm:$0xff]  ;;  %v1596_v15 = vmov 3   ;;  %v2921_v16 = vmov 4   ;;  %v2919_v17 = vmov 6  }
   0x5   :  { %v1682_v10 = vld [vmem:[%s2915_s0 + $0x40] sm:$0xff]  ;;  %v1689_v11 = vld [vmem:[%s2915_s0 + $0x58] sm:$0xff]  ;;  %v1694_v12 = vld [vmem:[%s2915_s0 + $0x50] sm:$0xff]  ;;  %s1597_s0 = smov 2   ;;  %v1804_v55 = vshrl.u32 %v340_v52, 7  ;;  %s1600_s11 = smov 127  }
   0x6   :  { %297 = vperm.xlu1 %1410, %v1641_v3   ;;  %287 = vperm.xlu0 %1409, %v1646_v4   ;;  %v1816_v61 = vld [vmem:[%s2917_s2] sm:$0xff] }
   0x7   :  { %v418_v56 = vsub.s32 1, %v1804_v55  ;;  %v342_v59 = vsub.s32 0, %v1804_v55  ;;  %v506_v60 = vsub.s32 2, %v1804_v55 }
   0x9   :  { %v1819_v62 = vrot.slane %v1816_v61, %v418_v56 }
   0xa   :  { %307 = vperm.xlu1 %1410, %v1653_v5   ;;  %302 = vperm.xlu0 %1409, %v1658_v6  }
   0xb   :  { %2972 = vst [vmem:[#allocation21_spill] sm:$0xff] %v1819_v62 }
   0xe   :  { %317 = vperm.xlu1 %1410, %v1665_v7   ;;  %312 = vperm.xlu0 %1409, %v1670_v8  }
  0x12   :  { %327 = vperm.xlu1 %1410, %v1677_v9   ;;  %322 = vperm.xlu0 %1409, %v1682_v10  }
  0x16   :  { %337 = vperm.xlu1 %1410, %v1689_v11   ;;  %332 = vperm.xlu0 %1409, %v1694_v12  }
  0x1a   :  { %1412 = vset.pattern.permute.xlu1 %v1594_v13  ;;  %1411 = vset.pattern.permute.xlu0 %v1594_v13  ;;  %v1826_v13 = vrot.slane %v1816_v61, %v342_v59 }
  0x1b   :  { %373 = vperm.xlu1 %1412, %v1646_v4   ;;  %369 = vperm.xlu0 %1411, %v1634_v1  }
  0x1c   :  { %2975 = vst [vmem:[#allocation24_spill] sm:$0xff] %v1826_v13 }
  0x1f   :  { %377 = vperm.xlu1 %1412, %v1629_v0   ;;  %381 = vperm.xlu0 %1411, %v1641_v3  }
  0x23   :  { %385 = vperm.xlu1 %1412, %v1658_v6   ;;  %389 = vperm.xlu0 %1411, %v1653_v5  }
  0x27   :  { %393 = vperm.xlu1 %1412, %v1670_v8   ;;  %397 = vperm.xlu0 %1411, %v1665_v7  }
  0x2b   :  { %401 = vperm.xlu1 %1412, %v1682_v10   ;;  %405 = vperm.xlu0 %1411, %v1677_v9  }
  0x2f   :  { %409 = vperm.xlu1 %1412, %v1694_v12   ;;  %413 = vperm.xlu0 %1411, %v1689_v11  }
  0x33   :  { %1413 = vset.pattern.permute.xlu1 %v1595_v14  ;;  %1414 = vset.pattern.permute.xlu0 %v1595_v14 }
  0x34   :  { %457 = vperm.xlu1 %1413, %v1634_v1   ;;  %461 = vperm.xlu0 %1414, %v1646_v4  }
  0x38   :  { %465 = vperm.xlu1 %1413, %v1629_v0   ;;  %473 = vperm.xlu0 %1414, %v1658_v6  }
  0x3c   :  { %469 = vperm.xlu1 %1413, %v1641_v3   ;;  %481 = vperm.xlu0 %1414, %v1670_v8  }
  0x40   :  { %477 = vperm.xlu1 %1413, %v1653_v5   ;;  %489 = vperm.xlu0 %1414, %v1682_v10  }
  0x44   :  { %485 = vperm.xlu1 %1413, %v1665_v7   ;;  %497 = vperm.xlu0 %1414, %v1694_v12  }
  0x48   :  { %493 = vperm.xlu1 %1413, %v1677_v9   ;;  %1415 = vset.pattern.permute.xlu0 %v1596_v15 }
  0x49   :  { %545 = vperm.xlu0 %1415, %v1634_v1  }
  0x4c   :  { %501 = vperm.xlu1 %1413, %v1689_v11  }
  0x4d   :  { %557 = vperm.xlu0 %1415, %v1641_v3  }
  0x50   :  { %1416 = vset.pattern.permute.xlu1 %v1596_v15  ;;  %v1830_v15 = vrot.slane %v1816_v61, %v506_v60 }
  0x51   :  { %549 = vperm.xlu1 %1416, %v1646_v4   ;;  %565 = vperm.xlu0 %1415, %v1653_v5  }
  0x52   :  { %2976 = vst [vmem:[#allocation25_spill] sm:$0xff] %v1830_v15 }
  0x55   :  { %553 = vperm.xlu1 %1416, %v1629_v0   ;;  %573 = vperm.xlu0 %1415, %v1665_v7  }
  0x59   :  { %561 = vperm.xlu1 %1416, %v1658_v6   ;;  %581 = vperm.xlu0 %1415, %v1677_v9  }
  0x5d   :  { %569 = vperm.xlu1 %1416, %v1670_v8   ;;  %589 = vperm.xlu0 %1415, %v1689_v11  }
  0x61   :  { %577 = vperm.xlu1 %1416, %v1682_v10   ;;  %646 = vrot.lane.b32.xlu0 %v1646_v4, %s1597_s0 }
  0x62   :  { %1418 = vset.pattern.permute.xlu0 %v2921_v16  ;;  %v594_v16 = vsub.s32 3, %v1804_v55 }
  0x65   :  { %585 = vperm.xlu1 %1416, %v1694_v12   ;;  %650 = vrot.lane.b32.xlu0 %v1641_v3, %s1597_s0 }
  0x69   :  { %644 = vrot.lane.b32.xlu1 %v1634_v1, %s1597_s0  ;;  %654 = vrot.lane.b32.xlu0 %v1653_v5, %s1597_s0 }
  0x6a   :  { %1417 = vset.pattern.permute.xlu1 %v2919_v17 }
  0x6d   :  { %648 = vrot.lane.b32.xlu1 %v1629_v0, %s1597_s0  ;;  %658 = vrot.lane.b32.xlu0 %v1665_v7, %s1597_s0 }
  0x71   :  { %652 = vrot.lane.b32.xlu1 %v1658_v6, %s1597_s0  ;;  %662 = vrot.lane.b32.xlu0 %v1677_v9, %s1597_s0 }
  0x75   :  { %656 = vrot.lane.b32.xlu1 %v1670_v8, %s1597_s0  ;;  %666 = vrot.lane.b32.xlu0 %v1689_v11, %s1597_s0 }
  0x79   :  { %660 = vrot.lane.b32.xlu1 %v1682_v10, %s1597_s0 }
  0x7d   :  { %v1747_v18 = vpop.permute.xlu1 %292  ;;  %v1749_v19 = vpop.permute.xlu0 %282  ;;  %664 = vrot.lane.b32.xlu1 %v1694_v12, %s1597_s0 }
  0x81   :  { %v1752_v20 = vpop.permute.xlu1 %297  ;;  %v1754_v21 = vpop.permute.xlu0 %287 }
  0x85   :  { %v1756_v22 = vpop.permute.xlu1 %307  ;;  %v303_v23 = vpop.permute.xlu0 %302 }
  0x86   :  { %v348_v52 = vsub.f32 %v303_v23, %v1826_v13 }
  0x89   :  { %v1758_v24 = vpop.permute.xlu1 %317  ;;  %v313_v25 = vpop.permute.xlu0 %312 }
  0x8a   :  { %v350_v59 = vsub.f32 %v313_v25, %v1826_v13 }
  0x8d   :  { %v1760_v26 = vpop.permute.xlu1 %327  ;;  %v1762_v27 = vpop.permute.xlu0 %322 }
  0x8e   :  { %2956 = vst [vmem:[#allocation5_spill] sm:$0xff] %v1760_v26  ;;  %v352_v25 = vsub.f32 %v1762_v27, %v1826_v13 }
  0x91   :  { %v1764_v28 = vpop.permute.xlu1 %337  ;;  %v1766_v29 = vpop.permute.xlu0 %332 }
  0x92   :  { %2957 = vst [vmem:[#allocation6_spill] sm:$0xff] %v1764_v28  ;;  %v354_v27 = vsub.f32 %v1766_v29, %v1826_v13 }
  0x96   :  { %v1768_v30 = vpop.permute.xlu1 %373  ;;  %v1770_v31 = vpop.permute.xlu0 %369 }
  0x9a   :  { %v1772_v32 = vpop.permute.xlu1 %377  ;;  %v1774_v33 = vpop.permute.xlu0 %381 }
  0x9e   :  { %v386_v34 = vpop.permute.xlu1 %385  ;;  %v1776_v35 = vpop.permute.xlu0 %389 }
  0x9f   :  { %2958 = vst [vmem:[#allocation7_spill] sm:$0xff] %v1776_v35  ;;  %v424_v14 = vsub.f32 %v386_v34, %v1819_v62 }
  0xa1   :  { %v436_v28 = vand.u32 2147483647, %v424_v14 }
  0xa2   :  { %v394_v36 = vpop.permute.xlu1 %393  ;;  %v1778_v37 = vpop.permute.xlu0 %397 }
  0xa3   :  { %2959 = vst [vmem:[#allocation8_spill] sm:$0xff] %v1778_v37 }
  0xa6   :  { %v402_v38 = vpop.permute.xlu1 %401  ;;  %v1780_v39 = vpop.permute.xlu0 %405 }
  0xa7   :  { %2960 = vst [vmem:[#allocation9_spill] sm:$0xff] %v1780_v39  ;;  %v428_v23 = vsub.f32 %v402_v38, %v1819_v62 }
  0xaa   :  { %v1782_v40 = vpop.permute.xlu1 %409  ;;  %v1784_v41 = vpop.permute.xlu0 %413 }
  0xab   :  { %2961 = vst [vmem:[#allocation10_spill] sm:$0xff] %v1784_v41  ;;  %v1843_v41 = vrot.slane %v1816_v61, %v594_v16  ;;  %v440_v16 = vand.u32 2147483647, %v428_v23 }
  0xad   :  { %2979 = vst [vmem:[#allocation28_spill] sm:$0xff] %v1843_v41 }
  0xaf   :  { %v1786_v42 = vpop.permute.xlu1 %457  ;;  %v1788_v43 = vpop.permute.xlu0 %461 }
  0xb0   :  { %2962 = vst [vmem:[#allocation11_spill] sm:$0xff] %v1786_v42  ;;  %2963 = vst [vmem:[#allocation12_spill] sm:$0xff] %v1788_v43 }
  0xb3   :  { %v1790_v44 = vpop.permute.xlu1 %465  ;;  %v474_v45 = vpop.permute.xlu0 %473 }
  0xb4   :  { %2964 = vst [vmem:[#allocation13_spill] sm:$0xff] %v1790_v44  ;;  %v512_v17 = vsub.f32 %v474_v45, %v1830_v15 }
  0xb6   :  { %v524_v34 = vand.u32 2147483647, %v512_v17 }
  0xb7   :  { %v1792_v46 = vpop.permute.xlu1 %469  ;;  %v482_v47 = vpop.permute.xlu0 %481 }
  0xb8   :  { %2965 = vst [vmem:[#allocation14_spill] sm:$0xff] %v1792_v46  ;;  %v514_v60 = vsub.f32 %v482_v47, %v1830_v15 }
  0xba   :  { %v526_v17 = vand.u32 2147483647, %v514_v60 }
  0xbb   :  { %v1794_v48 = vpop.permute.xlu1 %477  ;;  %v490_v49 = vpop.permute.xlu0 %489 }
  0xbc   :  { %2966 = vst [vmem:[#allocation15_spill] sm:$0xff] %v1794_v48  ;;  %v516_v47 = vsub.f32 %v490_v49, %v1830_v15 }
  0xbf   :  { %v1796_v50 = vpop.permute.xlu1 %485  ;;  %v1798_v51 = vpop.permute.xlu0 %497 }
  0xc0   :  { %2967 = vst [vmem:[#allocation16_spill] sm:$0xff] %v1796_v50  ;;  %v360_v50 = vand.u32 2147483647, %v348_v52  ;;  %v518_v49 = vsub.f32 %v1798_v51, %v1830_v15 }
  0xc2   :  { %v448_v39 = vadd.f32 %v436_v28, %v360_v50  ;;  %v430_v28 = vsub.f32 %v1782_v40, %v1819_v62  ;;  %v530_v29 = vand.u32 2147483647, %v518_v49 }
  0xc3   :  { %v1800_v53 = vpop.permute.xlu1 %493 }
  0xc4   :  { %2968 = vst [vmem:[#allocation17_spill] sm:$0xff] %v1800_v53  ;;  %v1802_v54 = vpop.permute.xlu0 %545  ;;  %v426_v53 = vsub.f32 %v394_v36, %v1819_v62  ;;  %v536_v36 = vadd.f32 %v524_v34, %v448_v39  ;;  %v528_v34 = vand.u32 2147483647, %v516_v47 }
  0xc5   :  { %2969 = vst [vmem:[#allocation18_spill] sm:$0xff] %v1802_v54 }
  0xc7   :  { %v1807_v57 = vpop.permute.xlu1 %501 }
  0xc8   :  { %2970 = vst [vmem:[#allocation19_spill] sm:$0xff] %v1807_v57  ;;  %v1809_v58 = vpop.permute.xlu0 %557 }
  0xc9   :  { %2971 = vst [vmem:[#allocation20_spill] sm:$0xff] %v1809_v58  ;;  %v438_v58 = vand.u32 2147483647, %v426_v53 }
  0xcc   :  { %v1821_v63 = vpop.permute.xlu1 %549  ;;  %v1823_v2 = vpop.permute.xlu0 %565 }
  0xcd   :  { %2973 = vst [vmem:[#allocation22_spill] sm:$0xff] %v1821_v63  ;;  %2974 = vst [vmem:[#allocation23_spill] sm:$0xff] %v1823_v2 }
  0xd0   :  { %v1835_v56 = vpop.permute.xlu1 %553  ;;  %v1837_v57 = vpop.permute.xlu0 %573 }
  0xd1   :  { %2977 = vst [vmem:[#allocation26_spill] sm:$0xff] %v1835_v56  ;;  %2978 = vst [vmem:[#allocation27_spill] sm:$0xff] %v1837_v57  ;;  %v362_v57 = vand.u32 2147483647, %v350_v59  ;;  %v364_v59 = vand.u32 2147483647, %v352_v25 }
  0xd2   :  { %v366_v25 = vand.u32 2147483647, %v354_v27 }
  0xd3   :  { %v450_v38 = vadd.f32 %v438_v58, %v362_v57  ;;  %v452_v23 = vadd.f32 %v440_v16, %v364_v59  ;;  %v442_v58 = vand.u32 2147483647, %v430_v28 }
  0xd4   :  { %v562_v45 = vpop.permute.xlu1 %561  ;;  %v1846_v2 = vpop.permute.xlu0 %581 }
  0xd5   :  { %2980 = vst [vmem:[#allocation29_spill] sm:$0xff] %v1846_v2  ;;  %v600_v14 = vsub.f32 %v562_v45, %v1843_v41  ;;  %v538_v39 = vadd.f32 %v526_v17, %v450_v38 }
  0xd7   :  { %v612_v52 = vand.u32 2147483647, %v600_v14 }
  0xd8   :  { %v570_v48 = vpop.permute.xlu1 %569  ;;  %v1852_v46 = vpop.permute.xlu0 %589 }
  0xd9   :  { %2981 = vst [vmem:[#allocation30_spill] sm:$0xff] %v1852_v46  ;;  %v1856_v50 = vadd.f32 %v612_v52, %v536_v36  ;;  %v602_v53 = vsub.f32 %v570_v48, %v1843_v41  ;;  %v540_v36 = vadd.f32 %v528_v34, %v452_v23  ;;  %v454_v52 = vadd.f32 %v442_v58, %v366_v25 }
  0xdb   :  { %2982 = vst [vmem:[#allocation31_spill] sm:$0xff] %v1856_v50  ;;  %v614_v60 = vand.u32 2147483647, %v602_v53  ;;  %v542_v53 = vadd.f32 %v530_v29, %v454_v52 }
  0xdc   :  { %v578_v45 = vpop.permute.xlu1 %577  ;;  %v647_v57 = vpop.permute.xlu0 %646 }
  0xdd   :  { %v1863_v14 = vadd.f32 %v614_v60, %v538_v39  ;;  %v604_v40 = vsub.f32 %v578_v45, %v1843_v41  ;;  %v1867_v48 = vsub.f32 %v1646_v4, %v647_v57 }
  0xdf   :  { %2983 = vst [vmem:[#allocation32_spill] sm:$0xff] %v1863_v14  ;;  %v616_v17 = vand.u32 2147483647, %v604_v40  ;;  %706 = vrot.lane.b32.xlu0 %v1867_v48, %s1600_s11 }
  0xe0   :  { %v586_v51 = vpop.permute.xlu1 %585  ;;  %v651_v47 = vpop.permute.xlu0 %650 }
  0xe1   :  { %v1871_v16 = vadd.f32 %v616_v17, %v540_v36  ;;  %v606_v38 = vsub.f32 %v586_v51, %v1843_v41  ;;  %v1875_v28 = vsub.f32 %v1641_v3, %v651_v47 }
  0xe3   :  { %2984 = vst [vmem:[#allocation33_spill] sm:$0xff] %v1871_v16  ;;  %v618_v59 = vand.u32 2147483647, %v606_v38  ;;  %710 = vrot.lane.b32.xlu0 %v1875_v28, %s1600_s11 }
  0xe4   :  { %v645_v27 = vpop.permute.xlu1 %644  ;;  %v655_v39 = vpop.permute.xlu0 %654 }
  0xe5   :  { %v1879_v34 = vadd.f32 %v618_v59, %v542_v53  ;;  %v1882_v49 = vsub.f32 %v1634_v1, %v645_v27  ;;  %v1885_v60 = vsub.f32 %v1653_v5, %v655_v39  ;;  %v1601_v39 = vmov 7  }
  0xe7   :  { %2985 = vst [vmem:[#allocation34_spill] sm:$0xff] %v1879_v34  ;;  %704 = vrot.lane.b32.xlu1 %v1882_v49, %s1600_s11  ;;  %714 = vrot.lane.b32.xlu0 %v1885_v60, %s1600_s11 }
  0xe8   :  { %v649_v23 = vpop.permute.xlu1 %648  ;;  %v659_v45 = vpop.permute.xlu0 %658 }
  0xe9   :  { %v1892_v57 = vsub.f32 %v1629_v0, %v649_v23  ;;  %v1895_v58 = vsub.f32 %v1665_v7, %v659_v45  ;;  %v2986_v23 = vmov 4   ;;  %v1602_v45 = vmov 5  }
  0xeb   :  { %708 = vrot.lane.b32.xlu1 %v1892_v57, %s1600_s11  ;;  %718 = vrot.lane.b32.xlu0 %v1895_v58, %s1600_s11 }
  0xec   :  { %v653_v40 = vpop.permute.xlu1 %652  ;;  %v663_v25 = vpop.permute.xlu0 %662 }
  0xed   :  { %v1902_v36 = vsub.f32 %v1658_v6, %v653_v40  ;;  %v1905_v29 = vsub.f32 %v1677_v9, %v663_v25  ;;  %v2987_v40 = vmov 6   ;;  %v15_v25 = vld [vmem:[%s2916_s1] sm:$0xff] }
  0xef   :  { %712 = vrot.lane.b32.xlu1 %v1902_v36, %s1600_s11  ;;  %722 = vrot.lane.b32.xlu0 %v1905_v29, %s1600_s11 }
  0xf0   :  { %v657_v17 = vpop.permute.xlu1 %656  ;;  %v667_v51 = vpop.permute.xlu0 %666 }
  0xf1   :  { %v1912_v47 = vsub.f32 %v1670_v8, %v657_v17  ;;  %v1915_v52 = vsub.f32 %v1689_v11, %v667_v51  ;;  %v18_v17 = vld [vmem:[%s2916_s1 + $0x18] sm:$0xff]  ;;  %v16_v51 = vld [vmem:[%s2916_s1 + $0x8] sm:$0xff] }
  0xf3   :  { %716 = vrot.lane.b32.xlu1 %v1912_v47, %s1600_s11  ;;  %726 = vrot.lane.b32.xlu0 %v1915_v52, %s1600_s11 }
  0xf4   :  { %v661_v38 = vpop.permute.xlu1 %660 }
  0xf5   :  { %v1922_v53 = vsub.f32 %v1682_v10, %v661_v38  ;;  %v1385_v38 = vmul.f32 -1.442695, %v16_v51 }
  0xf7   :  { %720 = vrot.lane.b32.xlu1 %v1922_v53, %s1600_s11  ;;  %825 = vperm.xlu0 %1418, %v1634_v1  }
  0xf8   :  { %v665_v59 = vpop.permute.xlu1 %664 }
  0xf9   :  { %v1928_v27 = vsub.f32 %v1694_v12, %v665_v59 }
  0xfb   :  { %724 = vrot.lane.b32.xlu1 %v1928_v27, %s1600_s11  ;;  %837 = vperm.xlu0 %1418, %v1641_v3  }
  0xff   :  { %761 = vperm.xlu1 %1417, %v1634_v1   ;;  %845 = vperm.xlu0 %1418, %v1653_v5  }
 0x103   :  { %769 = vperm.xlu1 %1417, %v1629_v0   ;;  %853 = vperm.xlu0 %1418, %v1665_v7  }
 0x107   :  { %773 = vperm.xlu1 %1417, %v1641_v3   ;;  %861 = vperm.xlu0 %1418, %v1677_v9  }
 0x10b   :  { %781 = vperm.xlu1 %1417, %v1653_v5   ;;  %869 = vperm.xlu0 %1418, %v1689_v11  }
 0x10f   :  { %789 = vperm.xlu1 %1417, %v1665_v7   ;;  %1421 = vset.pattern.permute.xlu0 %v1601_v39 }
 0x110   :  { %917 = vperm.xlu0 %1421, %v1646_v4  }
 0x113   :  { %797 = vperm.xlu1 %1417, %v1677_v9  }
 0x114   :  { %929 = vperm.xlu0 %1421, %v1658_v6  }
 0x117   :  { %805 = vperm.xlu1 %1417, %v1689_v11  }
 0x118   :  { %937 = vperm.xlu0 %1421, %v1670_v8  }
 0x11b   :  { %1419 = vset.pattern.permute.xlu1 %v2986_v23 }
 0x11c   :  { %829 = vperm.xlu1 %1419, %v1646_v4   ;;  %945 = vperm.xlu0 %1421, %v1682_v10  }
 0x120   :  { %833 = vperm.xlu1 %1419, %v1629_v0   ;;  %953 = vperm.xlu0 %1421, %v1694_v12  }
 0x124   :  { %841 = vperm.xlu1 %1419, %v1658_v6   ;;  %1422 = vset.pattern.permute.xlu0 %v1602_v45 }
 0x125   :  { %977 = vperm.xlu0 %1422, %v1634_v1  }
 0x128   :  { %849 = vperm.xlu1 %1419, %v1670_v8  }
 0x129   :  { %989 = vperm.xlu0 %1422, %v1641_v3  }
 0x12c   :  { %857 = vperm.xlu1 %1419, %v1682_v10  }
 0x12d   :  { %997 = vperm.xlu0 %1422, %v1653_v5  }
 0x130   :  { %865 = vperm.xlu1 %1419, %v1694_v12  }
 0x131   :  { %1005 = vperm.xlu0 %1422, %v1665_v7  }
 0x134   :  { %1420 = vset.pattern.permute.xlu1 %v1601_v39  ;;  %v22_v39 = vld [vmem:[%s2916_s1 + $0x38] sm:$0xff] }
 0x135   :  { %913 = vperm.xlu1 %1420, %v1634_v1   ;;  %1013 = vperm.xlu0 %1422, %v1677_v9   ;;  %v1384_v1 = vmul.f32 -1.442695, %v15_v25 }
 0x137   :  { %1426 = vpow2.f32 %v1384_v1  ;;  %v1391_v1 = vmul.f32 -1.442695, %v22_v39 }
 0x139   :  { %921 = vperm.xlu1 %1420, %v1629_v0   ;;  %1021 = vperm.xlu0 %1422, %v1689_v11  }
 0x13d   :  { %925 = vperm.xlu1 %1420, %v1641_v3   ;;  %1424 = vset.pattern.permute.xlu0 %v2987_v40  ;;  %v1387_v3 = vmul.f32 -1.442695, %v18_v17 }
 0x13e   :  { %765 = vperm.xlu0 %1424, %v1646_v4  }
 0x13f   :  { %1428 = vpow2.f32 %v1387_v3  ;;  %v19_v3 = vld [vmem:[%s2916_s1 + $0x20] sm:$0xff] }
 0x140   :  { %1430 = vpow2.f32 %v1385_v38 }
 0x141   :  { %933 = vperm.xlu1 %1420, %v1653_v5   ;;  %v20_v5 = vld [vmem:[%s2916_s1 + $0x28] sm:$0xff] }
 0x142   :  { %777 = vperm.xlu0 %1424, %v1658_v6  }
 0x144   :  { %v1427_v25 = vpop.eup %1426 }
 0x145   :  { %941 = vperm.xlu1 %1420, %v1665_v7   ;;  %v1389_v7 = vmul.f32 -1.442695, %v20_v5  ;;  %v24_v5 = vld [vmem:[%s2916_s1 + $0x48] sm:$0xff] }
 0x146   :  { %785 = vperm.xlu0 %1424, %v1670_v8   ;;  %v1393_v39 = vmul.f32 -1.442695, %v24_v5  ;;  %v23_v5 = vld [vmem:[%s2916_s1 + $0x40] sm:$0xff] }
 0x147   :  { %1432 = vpow2.f32 %v1389_v7 }
 0x149   :  { %949 = vperm.xlu1 %1420, %v1677_v9   ;;  %v17_v9 = vld [vmem:[%s2916_s1 + $0x10] sm:$0xff] }
 0x14a   :  { %793 = vperm.xlu0 %1424, %v1682_v10  }
 0x14c   :  { %v1429_v51 = vpop.eup %1428 }
 0x14d   :  { %957 = vperm.xlu1 %1420, %v1689_v11   ;;  %v1386_v11 = vmul.f32 -1.442695, %v17_v9  ;;  %v66_v38 = vadd.f32 1.0, %v1429_v51 }
 0x14e   :  { %801 = vperm.xlu0 %1424, %v1694_v12  }
 0x14f   :  { %1434 = vpow2.f32 %v1386_v11 }
 0x150   :  { %1436 = vpow2.f32 %v1391_v1 }
 0x151   :  { %1423 = vset.pattern.permute.xlu1 %v1602_v45  ;;  %v707_v59 = vpop.permute.xlu0 %706  ;;  %v63_v45 = vadd.f32 1.0, %v1427_v25  ;;  %v26_v25 = vld [vmem:[%s2916_s1 + $0x58] sm:$0xff] }
 0x152   :  { %v741_v23 = vmul.f32 %v707_v59, %v1867_v48  ;;  %981 = vperm.xlu1 %1423, %v1646_v4   ;;  %v1388_v4 = vmul.f32 -1.442695, %v19_v3  ;;  %v1431_v59 = vpop.eup %1430 }
 0x153   :  { %1438 = vrcp.f32 %v63_v45  ;;  %v64_v11 = vadd.f32 1.0, %v1431_v59 }
 0x154   :  { %1155 = vperm.xlu0 %1424, %v741_v23   ;;  %1440 = vpow2.f32 %v1388_v4  ;;  %v1433_v23 = vpop.eup %1432  ;;  %v1395_v4 = vmul.f32 -1.442695, %v26_v25 }
 0x155   :  { %v1995_v17 = vpop.permute.xlu0 %710  ;;  %1442 = vrcp.f32 %v66_v38  ;;  %v68_v51 = vadd.f32 1.0, %v1433_v23 }
 0x156   :  { %985 = vperm.xlu1 %1423, %v1629_v0   ;;  %v21_v0 = vld [vmem:[%s2916_s1 + $0x30] sm:$0xff]  ;;  %1444 = vpow2.f32 %v1393_v39  ;;  %v1392_v39 = vmul.f32 -1.442695, %v23_v5 }
 0x159   :  { %v705_v48 = vpop.permute.xlu1 %704  ;;  %v2008_v7 = vpop.permute.xlu0 %714 }
 0x15a   :  { %993 = vperm.xlu1 %1423, %v1658_v6   ;;  %v1390_v6 = vmul.f32 -1.442695, %v21_v0  ;;  %v740_v25 = vmul.f32 %v705_v48, %v1882_v49 }
 0x15c   :  { %1446 = vpow2.f32 %v1390_v6 }
 0x15d   :  { %v709_v9 = vpop.permute.xlu1 %708  ;;  %v2014_v45 = vpop.permute.xlu0 %718  ;;  %1448 = vrcp.f32 %v64_v11 }
 0x15e   :  { %1001 = vperm.xlu1 %1423, %v1670_v8   ;;  %v1435_v8 = vpop.eup %1434  ;;  %1450 = vrcp.f32 %v68_v51 }
 0x15f   :  { %v1437_v0 = vpop.eup %1436  ;;  %1452 = vpow2.f32 %v1395_v4  ;;  %v742_v4 = vmul.f32 %v709_v9, %v1892_v57  ;;  %v743_v57 = vmul.f32 %v1995_v17, %v1875_v28  ;;  %v874_v9 = vsub.s32 4, %v1804_v55 }
 0x160   :  { %v2028_v23 = vpop.eup %1438  ;;  %v70_v11 = vadd.f32 1.0, %v1437_v0  ;;  %v745_v17 = vmul.f32 %v2008_v7, %v1885_v60 }
 0x161   :  { %v713_v1 = vpop.permute.xlu1 %712  ;;  %v2026_v6 = vpop.permute.xlu0 %722  ;;  %v2034_v51 = vsub.f32 1.0, %v2028_v23 }
 0x162   :  { %v744_v3 = vmul.f32 %v713_v1, %v1902_v36  ;;  %1009 = vperm.xlu1 %1423, %v1682_v10   ;;  %v65_v36 = vadd.f32 1.0, %v1435_v8  ;;  %v25_v10 = vld [vmem:[%s2916_s1 + $0x50] sm:$0xff] }
 0x163   :  { %v147_v0 = vadd.f32 1e-06, %v2034_v51 }
 0x164   :  { %1170 = vperm.xlu0 %1424, %v744_v3   ;;  %1454 = vrcp.f32 %v65_v36  ;;  %v1441_v3 = vpop.eup %1440  ;;  %v207_v36 = vadd.f32 1e-06, %v2028_v23 }
 0x165   :  { %v717_v38 = vpop.permute.xlu1 %716  ;;  %1456 = vpow2.f32 %v1392_v39  ;;  %v2036_v8 = vpop.eup %1442  ;;  %v67_v5 = vadd.f32 1.0, %v1441_v3  ;;  %v2062_v3 = vrot.slane %v1816_v61, %v874_v9 }
 0x166   :  { %v746_v59 = vmul.f32 %v717_v38, %v1912_v47  ;;  %1017 = vperm.xlu1 %1423, %v1694_v12   ;;  %v1394_v47 = vmul.f32 -1.442695, %v25_v10  ;;  %1458 = vrcp.f32 %v70_v11  ;;  %v2039_v48 = vpop.permute.xlu0 %726 }
 0x168   :  { %1180 = vperm.xlu0 %1424, %v746_v59   ;;  %1460 = vpow2.f32 %v1394_v47  ;;  %v2044_v59 = vsub.f32 1.0, %v2036_v8 }
 0x169   :  { %v721_v1 = vpop.permute.xlu1 %720  ;;  %1462 = vrcp.f32 %v67_v5 }
 0x16a   :  { %v748_v12 = vmul.f32 %v721_v1, %v1922_v53  ;;  %1425 = vset.pattern.permute.xlu1 %v2987_v40  ;;  %v1445_v40 = vpop.eup %1444  ;;  %1464 = vlog2.f32 %v147_v0  ;;  %v150_v47 = vadd.f32 1e-06, %v2044_v59  ;;  %v747_v0 = vmul.f32 %v2014_v45, %v1895_v58 }
 0x16b   :  { %1150 = vperm.xlu1 %1425, %v740_v25   ;;  %v1447_v38 = vpop.eup %1446  ;;  %v2924_v25 = vsub.s32 6, %v1804_v55  ;;  %1466 = vlog2.f32 %v207_v36 }
 0x16c   :  { %1190 = vperm.xlu0 %1424, %v748_v12   ;;  %v2050_v10 = vpop.eup %1448  ;;  %v69_v11 = vadd.f32 1.0, %v1447_v38 }
 0x16d   :  { %v725_v49 = vpop.permute.xlu1 %724  ;;  %v2053_v1 = vpop.eup %1450  ;;  %v2057_v28 = vsub.f32 1.0, %v2050_v10  ;;  %v112_v44 = vmul.f32 %v2050_v10, %v2050_v10 }
 0x16e   :  { %v750_v53 = vmul.f32 %v725_v49, %v1928_v27  ;;  %v72_v27 = vadd.f32 1.0, %v1445_v40  ;;  %v1453_v12 = vpop.eup %1452  ;;  %v2073_v40 = vrot.slane %v1816_v61, %v2924_v25  ;;  %v208_v61 = vadd.f32 1e-06, %v2050_v10 }
 0x16f   :  { %1160 = vperm.xlu1 %1425, %v742_v4   ;;  %v210_v4 = vadd.f32 1e-06, %v2036_v8  ;;  %v74_v60 = vadd.f32 1.0, %v1453_v12  ;;  %v148_v38 = vadd.f32 1e-06, %v2057_v28  ;;  %v749_v25 = vmul.f32 %v2026_v6, %v1905_v29 }
 0x170   :  { %1200 = vperm.xlu0 %1424, %v750_v53   ;;  %1468 = vrcp.f32 %v72_v27  ;;  %v2068_v53 = vsub.f32 1.0, %v2053_v1  ;;  %2988 = vst [vmem:[#allocation35_spill] sm:$0xff] %v2073_v40 }
 0x171   :  { %1470 = vrcp.f32 %v69_v11  ;;  %v2075_v5 = vpop.eup %1454 }
 0x172   :  { %v826_v39 = vpop.permute.xlu0 %825  ;;  %1472 = vlog2.f32 %v150_v47  ;;  %v1457_v7 = vpop.eup %1456  ;;  %v152_v12 = vadd.f32 1e-06, %v2068_v53  ;;  %v209_v29 = vadd.f32 1e-06, %v2075_v5 }
 0x173   :  { %1165 = vperm.xlu1 %1425, %v743_v57   ;;  %v876_v36 = vmax.f32 %v826_v39, %v2062_v3  ;;  %v1076_v57 = vmin.f32 %v826_v39, %v2062_v3  ;;  %v2082_v9 = vpop.eup %1458  ;;  %1474 = vlog2.f32 %v210_v4  ;;  %v212_v39 = vadd.f32 1e-06, %v2053_v1 }
 0x174   :  { %1476 = vrcp.f32 %v74_v60  ;;  %v71_v4 = vadd.f32 1.0, %v1457_v7  ;;  %v2101_v34 = vsub.f32 1.0, %v2082_v9 }
 0x175   :  { %v1461_v47 = vpop.eup %1460  ;;  %1478 = vlog2.f32 %v148_v38  ;;  %v751_v38 = vmul.f32 %v2039_v48, %v1915_v52 }
 0x176   :  { %v2065_v49 = vpop.permute.xlu0 %837  ;;  %1480 = vlog2.f32 %v208_v61  ;;  %v73_v16 = vadd.f32 1.0, %v1461_v47  ;;  %v2108_v7 = vpop.eup %1462  ;;  %v154_v47 = vadd.f32 1e-06, %v2101_v34 }
 0x177   :  { %1175 = vperm.xlu1 %1425, %v745_v17   ;;  %v2089_v17 = vsub.f32 1.0, %v2075_v5  ;;  %1482 = vlog2.f32 %v152_v12  ;;  %v1465_v6 = vpop.eup %1464  ;;  %v2127_v48 = vsub.f32 1.0, %v2108_v7 }
 0x178   :  { %1484 = vrcp.f32 %v71_v4  ;;  %v1467_v61 = vpop.eup %1466 }
 0x179   :  { %v149_v60 = vadd.f32 1e-06, %v2089_v17  ;;  %1486 = vlog2.f32 %v212_v39  ;;  %v151_v37 = vadd.f32 1e-06, %v2127_v48 }
 0x17a   :  { %v762_v27 = vpop.permute.xlu1 %761  ;;  %v2085_v11 = vpop.permute.xlu0 %845  ;;  %1488 = vrcp.f32 %v73_v16 }
 0x17b   :  { %v812_v58 = vmin.f32 %v762_v27, %v2073_v40  ;;  %v1064_v45 = vmax.f32 %v762_v27, %v2073_v40  ;;  %1185 = vperm.xlu1 %1425, %v747_v0   ;;  %v123_v27 = vmul.f32 %v2034_v51, %v2034_v51  ;;  %1490 = vlog2.f32 %v149_v60 }
 0x17c   :  { %1492 = vlog2.f32 %v209_v29  ;;  %v214_v51 = vadd.f32 1e-06, %v2082_v9  ;;  %v881_v39 = vmax.f32 %v2085_v11, %v2062_v3  ;;  %v1081_v4 = vmin.f32 %v2085_v11, %v2062_v3 }
 0x17d   :  { %v2096_v46 = vsub.f32 %v812_v58, %v876_v36  ;;  %v2098_v2 = vsub.f32 %v1064_v45, %v1076_v57  ;;  %v879_v36 = vmax.f32 %v2065_v49, %v2062_v3  ;;  %v1079_v57 = vmin.f32 %v2065_v49, %v2062_v3  ;;  %v2124_v52 = vpop.eup %1468 }
 0x17e   :  { %v2103_v14 = vpop.permute.xlu1 %769  ;;  %v2105_v0 = vpop.permute.xlu0 %853  ;;  %1494 = vlog2.f32 %v154_v47 }
 0x17f   :  { %2989 = vst [vmem:[#allocation36_spill] sm:$0xff] %v2096_v46  ;;  %2990 = vst [vmem:[#allocation37_spill] sm:$0xff] %v2098_v2  ;;  %1195 = vperm.xlu1 %1425, %v749_v25   ;;  %v111_v25 = vmul.f32 %v2028_v23, %v2028_v23  ;;  %v2131_v23 = vpop.eup %1470  ;;  %v160_v46 = vmul.f32 0.6931472, %v1465_v6  ;;  %1496 = vlog2.f32 %v214_v51  ;;  %v211_v6 = vadd.f32 1e-06, %v2108_v7 }
 0x180   :  { %v1473_v16 = vpop.eup %1472  ;;  %v216_v51 = vadd.f32 1e-06, %v2124_v52  ;;  %1498 = vlog2.f32 %v151_v37 }
 0x181   :  { %v135_v2 = vmul.f32 -0.75, %v111_v25  ;;  %v1475_v63 = vpop.eup %1474  ;;  %1500 = vlog2.f32 %v211_v6 }
 0x182   :  { %v774_v12 = vpop.permute.xlu1 %773  ;;  %v2122_v58 = vpop.permute.xlu0 %861  ;;  %1502 = vlog2.f32 %v216_v51 }
 0x183   :  { %v815_v49 = vmin.f32 %v774_v12, %v2073_v40  ;;  %v1067_v45 = vmax.f32 %v774_v12, %v2073_v40  ;;  %1205 = vperm.xlu1 %1425, %v751_v38   ;;  %v195_v12 = vmul.f32 -0.25, %v123_v27  ;;  %v114_v38 = vmul.f32 %v2036_v8, %v2036_v8  ;;  %v2152_v25 = vpop.eup %1476 }
 0x184   :  { %v883_v8 = vmax.f32 %v2105_v0, %v2062_v3  ;;  %v1083_v27 = vmin.f32 %v2105_v0, %v2062_v3  ;;  %v2166_v41 = vmul.f32 %v160_v46, %v135_v2  ;;  %v885_v46 = vmax.f32 %v2122_v58, %v2062_v3 }
 0x185   :  { %v2138_v60 = vsub.f32 %v815_v49, %v879_v36  ;;  %v2140_v50 = vsub.f32 %v1067_v45, %v1079_v57  ;;  %v220_v36 = vmul.f32 0.6931472, %v1467_v61  ;;  %v126_v57 = vmul.f32 %v2044_v59, %v2044_v59  ;;  %v1479_v45 = vpop.eup %1478 }
 0x186   :  { %v782_v29 = vpop.permute.xlu1 %781  ;;  %v2144_v56 = vpop.permute.xlu0 %869  ;;  %v138_v61 = vmul.f32 -0.75, %v114_v38  ;;  %v2163_v59 = vsub.f32 1.0, %v2124_v52  ;;  %v226_v38 = vmul.f32 0.6931472, %v1475_v63  ;;  %v1085_v37 = vmin.f32 %v2122_v58, %v2062_v3 }
 0x187   :  { %2991 = vst [vmem:[#allocation38_spill] sm:$0xff] %v2138_v60  ;;  %2992 = vst [vmem:[#allocation39_spill] sm:$0xff] %v2140_v50  ;;  %v817_v54 = vmin.f32 %v782_v29, %v2073_v40  ;;  %v1069_v11 = vmax.f32 %v782_v29, %v2073_v40  ;;  %v166_v29 = vmul.f32 0.6931472, %v1473_v16  ;;  %v1481_v50 = vpop.eup %1480  ;;  %v2173_v16 = vsub.f32 1.0, %v2131_v23 }
 0x189   :  { %v2158_v47 = vsub.f32 %v817_v54, %v881_v39  ;;  %v2160_v49 = vsub.f32 %v1069_v11, %v1081_v4  ;;  %v1483_v39 = vpop.eup %1482  ;;  %v198_v4 = vmul.f32 -0.25, %v126_v57  ;;  %v2187_v63 = vmul.f32 %v166_v29, %v138_v61 }
 0x18a   :  { %v790_v60 = vpop.permute.xlu1 %789  ;;  %v2175_v11 = vpop.eup %1484  ;;  %v156_v57 = vadd.f32 1e-06, %v2163_v59  ;;  %v116_v61 = vmul.f32 %v2053_v1, %v2053_v1  ;;  %v153_v29 = vadd.f32 1e-06, %v2173_v16  ;;  %v213_v1 = vadd.f32 1e-06, %v2131_v23 }
 0x18b   :  { %2993 = vst [vmem:[#allocation40_spill] sm:$0xff] %v2158_v47  ;;  %2994 = vst [vmem:[#allocation41_spill] sm:$0xff] %v2160_v49  ;;  %v819_v35 = vmin.f32 %v790_v60, %v2073_v40  ;;  %v1071_v54 = vmax.f32 %v790_v60, %v2073_v40  ;;  %v2170_v0 = vpop.permute.xlu0 %917  ;;  %v2185_v47 = vmul.f32 %v220_v36, %v195_v12  ;;  %v2208_v10 = vsub.f32 1.0, %v2175_v11 }
 0x18c   :  { %2995 = vst [vmem:[#allocation42_spill] sm:$0xff] %v2170_v0  ;;  %v1487_v0 = vpop.eup %1486  ;;  %2998 = vst [vmem:[#allocation45_spill] sm:$0xff] %v2187_v63  ;;  %1504 = vlog2.f32 %v156_v57  ;;  %v215_v43 = vadd.f32 1e-06, %v2175_v11 }
 0x18d   :  { %v2181_v2 = vsub.f32 %v819_v35, %v883_v8  ;;  %v2183_v60 = vsub.f32 %v1071_v54, %v1083_v27  ;;  %v2190_v49 = vpop.eup %1488  ;;  %v124_v35 = vmul.f32 %v2057_v28, %v2057_v28  ;;  %v2202_v27 = vmul.f32 %v226_v38, %v198_v4 }
 0x18e   :  { %v798_v6 = vpop.permute.xlu1 %797  ;;  %v2200_v36 = vpop.eup %1490  ;;  %v887_v28 = vmax.f32 %v2144_v56, %v2062_v3  ;;  %v1087_v54 = vmin.f32 %v2144_v56, %v2062_v3  ;;  %v128_v4 = vmul.f32 %v2068_v53, %v2068_v53  ;;  %v2222_v38 = vsub.f32 1.0, %v2190_v49 }
 0x18f   :  { %2996 = vst [vmem:[#allocation43_spill] sm:$0xff] %v2181_v2  ;;  %2997 = vst [vmem:[#allocation44_spill] sm:$0xff] %v2183_v60  ;;  %v821_v58 = vmin.f32 %v798_v6, %v2073_v40  ;;  %v1073_v8 = vmax.f32 %v798_v6, %v2073_v40  ;;  %v2198_v12 = vpop.permute.xlu0 %929  ;;  %v1493_v51 = vpop.eup %1492  ;;  %v222_v53 = vmul.f32 0.6931472, %v1481_v50  ;;  %v155_v57 = vadd.f32 1e-06, %v2208_v10 }
 0x190   :  { %2999 = vst [vmem:[#allocation46_spill] sm:$0xff] %v2198_v12  ;;  %3000 = vst [vmem:[#allocation47_spill] sm:$0xff] %v2202_v27  ;;  %v162_v12 = vmul.f32 0.6931472, %v1479_v45  ;;  %1506 = vlog2.f32 %v153_v29  ;;  %v2239_v50 = vsub.f32 1.0, %v2152_v25 }
 0x191   :  { %v2214_v6 = vsub.f32 %v821_v58, %v885_v46  ;;  %v2216_v2 = vsub.f32 %v1073_v8, %v1085_v37  ;;  %v1495_v37 = vpop.eup %1494  ;;  %v136_v58 = vmul.f32 -0.75, %v112_v44  ;;  %v196_v8 = vmul.f32 -0.25, %v124_v35 }
 0x192   :  { %v806_v60 = vpop.permute.xlu1 %805  ;;  %1508 = vlog2.f32 %v213_v1  ;;  %v170_v44 = vmul.f32 0.6931472, %v1483_v39  ;;  %v113_v39 = vmul.f32 %v2075_v5, %v2075_v5  ;;  %v127_v5 = vmul.f32 %v2127_v48, %v2127_v48 }
 0x193   :  { %3001 = vst [vmem:[#allocation48_spill] sm:$0xff] %v2214_v6  ;;  %3002 = vst [vmem:[#allocation49_spill] sm:$0xff] %v2216_v2  ;;  %v823_v26 = vmin.f32 %v806_v60, %v2073_v40  ;;  %v1075_v56 = vmax.f32 %v806_v60, %v2073_v40  ;;  %v2227_v46 = vpop.permute.xlu0 %937  ;;  %v1497_v6 = vpop.eup %1496  ;;  %v217_v2 = vadd.f32 1e-06, %v2190_v49  ;;  %v157_v60 = vadd.f32 1e-06, %v2222_v38 }
 0x194   :  { %3003 = vst [vmem:[#allocation50_spill] sm:$0xff] %v2227_v46  ;;  %v140_v46 = vmul.f32 -0.75, %v116_v61  ;;  %1510 = vlog2.f32 %v215_v43  ;;  %v2249_v15 = vmul.f32 %v222_v53, %v196_v8  ;;  %v125_v43 = vmul.f32 %v2089_v17, %v2089_v17 }
 0x195   :  { %v2231_v42 = vsub.f32 %v823_v26, %v887_v28  ;;  %v2233_v45 = vsub.f32 %v1075_v56, %v1087_v54  ;;  %v1499_v26 = vpop.eup %1498  ;;  %v2247_v54 = vmul.f32 %v162_v12, %v136_v58  ;;  %v200_v56 = vmul.f32 -0.25, %v128_v4 }
 0x196   :  { %1512 = vlog2.f32 %v155_v57  ;;  %v1501_v1 = vpop.eup %1500  ;;  %v230_v61 = vmul.f32 0.6931472, %v1487_v0  ;;  %v130_v12 = vmul.f32 %v2101_v34, %v2101_v34  ;;  %v2259_v58 = vmul.f32 %v170_v44, %v140_v46 }
 0x197   :  { %3004 = vst [vmem:[#allocation51_spill] sm:$0xff] %v2231_v42  ;;  %3005 = vst [vmem:[#allocation52_spill] sm:$0xff] %v2233_v45  ;;  %v2241_v35 = vpop.permute.xlu1 %829  ;;  %v2243_v29 = vpop.permute.xlu0 %945  ;;  %1514 = vlog2.f32 %v217_v2  ;;  %v118_v42 = vmul.f32 %v2082_v9, %v2082_v9  ;;  %v115_v8 = vmul.f32 %v2108_v7, %v2108_v7  ;;  %v158_v17 = vadd.f32 1e-06, %v2239_v50 }
 0x198   :  { %1516 = vlog2.f32 %v157_v60  ;;  %v1503_v4 = vpop.eup %1502  ;;  %3006 = vst [vmem:[#allocation53_spill] sm:$0xff] %v2259_v58  ;;  %v814_v9 = vmin.f32 %v2103_v14, %v2073_v40  ;;  %v1066_v34 = vmax.f32 %v2103_v14, %v2073_v40  ;;  %v137_v57 = vmul.f32 -0.75, %v113_v39 }
 0x199   :  { %v164_v7 = vmul.f32 0.6931472, %v2200_v36  ;;  %v197_v60 = vmul.f32 -0.25, %v125_v43  ;;  %v224_v48 = vmul.f32 0.6931472, %v1493_v51  ;;  %v2275_v44 = vmul.f32 %v230_v61, %v200_v56  ;;  %v1505_v45 = vpop.eup %1504 }
 0x19a   :  { %v132_v28 = vmul.f32 %v2163_v59, %v2163_v59  ;;  %v142_v14 = vmul.f32 -0.75, %v118_v42  ;;  %v174_v40 = vmul.f32 0.6931472, %v1495_v37  ;;  %1518 = vlog2.f32 %v158_v17 }
 0x19b   :  { %v834_v2 = vpop.permute.xlu1 %833  ;;  %v2266_v0 = vpop.permute.xlu0 %953  ;;  %3007 = vst [vmem:[#allocation54_spill] sm:$0xff] %v2275_v44  ;;  %v139_v36 = vmul.f32 -0.75, %v115_v8  ;;  %v168_v51 = vmul.f32 0.6931472, %v1499_v26  ;;  %v199_v56 = vmul.f32 -0.25, %v127_v5  ;;  %v2289_v59 = vmul.f32 %v164_v7, %v137_v57 }
 0x19c   :  { %v878_v46 = vmax.f32 %v834_v2, %v2062_v3  ;;  %v1078_v53 = vmin.f32 %v834_v2, %v2062_v3  ;;  %v120_v2 = vmul.f32 %v2124_v52, %v2124_v52  ;;  %v228_v43 = vmul.f32 0.6931472, %v1501_v1 }
 0x19d   :  { %v1507_v42 = vpop.eup %1506  ;;  %v204_v52 = vmul.f32 -0.25, %v132_v28  ;;  %v238_v17 = vmul.f32 0.6931472, %v1503_v4  ;;  %v117_v8 = vmul.f32 %v2131_v23, %v2131_v23  ;;  %v2299_v5 = vmul.f32 %v174_v40, %v142_v14 }
 0x19e   :  { %v2279_v63 = vsub.f32 %v814_v9, %v878_v46  ;;  %v2281_v27 = vsub.f32 %v1066_v34, %v1078_v53  ;;  %v2291_v9 = vmul.f32 %v224_v48, %v197_v60  ;;  %v202_v34 = vmul.f32 -0.25, %v130_v12 }
 0x19f   :  { %v2285_v39 = vpop.permute.xlu1 %841  ;;  %v234_v46 = vmul.f32 0.6931472, %v1497_v6  ;;  %v1509_v26 = vpop.eup %1508  ;;  %3009 = vst [vmem:[#allocation56_spill] sm:$0xff] %v2299_v5  ;;  %v144_v53 = vmul.f32 -0.75, %v120_v2  ;;  %v129_v12 = vmul.f32 %v2173_v16, %v2173_v16  ;;  %v2305_v7 = vmul.f32 %v168_v51, %v139_v36 }
 0x1a0   :  { %3008 = vst [vmem:[#allocation55_spill] sm:$0xff] %v2281_v27  ;;  %v2287_v61 = vpop.permute.xlu0 %977  ;;  %v2307_v28 = vmul.f32 %v228_v43, %v199_v56  ;;  %v178_v4 = vmul.f32 0.6931472, %v1505_v45  ;;  %v122_v23 = vmul.f32 %v2152_v25, %v2152_v25  ;;  %v119_v16 = vmul.f32 %v2175_v11, %v2175_v11 }
 0x1a1   :  { %v1511_v57 = vpop.eup %1510  ;;  %3010 = vst [vmem:[#allocation57_spill] sm:$0xff] %v2305_v7  ;;  %v2315_v14 = vmul.f32 %v234_v46, %v202_v34  ;;  %v131_v2 = vmul.f32 %v2208_v10, %v2208_v10  ;;  %v2321_v51 = vmul.f32 %v238_v17, %v204_v52  ;;  %v141_v45 = vmul.f32 -0.75, %v117_v8 }
 0x1a2   :  { %3011 = vst [vmem:[#allocation58_spill] sm:$0xff] %v2307_v28  ;;  %v121_v56 = vmul.f32 %v2190_v49, %v2190_v49  ;;  %v133_v43 = vmul.f32 %v2222_v38, %v2222_v38  ;;  %v172_v40 = vmul.f32 0.6931472, %v1507_v42  ;;  %v201_v34 = vmul.f32 -0.25, %v129_v12 }
 0x1a3   :  { %v2303_v6 = vpop.permute.xlu1 %849  ;;  %v1513_v48 = vpop.eup %1512  ;;  %3012 = vst [vmem:[#allocation59_spill] sm:$0xff] %v2315_v14  ;;  %3013 = vst [vmem:[#allocation60_spill] sm:$0xff] %v2321_v51  ;;  %v232_v46 = vmul.f32 0.6931472, %v1509_v26  ;;  %v134_v11 = vmul.f32 %v2239_v50, %v2239_v50  ;;  %v2333_v52 = vmul.f32 %v178_v4, %v144_v53  ;;  %v2335_v17 = vmul.f32 -0.75, %v122_v23 }
 0x1a4   :  { %v2311_v60 = vpop.permute.xlu0 %989  ;;  %v1515_v36 = vpop.eup %1514  ;;  %v218_v49 = vadd.f32 1e-06, %v2152_v25  ;;  %v143_v38 = vmul.f32 -0.75, %v119_v16  ;;  %v176_v42 = vmul.f32 0.6931472, %v1513_v48  ;;  %v203_v12 = vmul.f32 -0.25, %v131_v2 }
 0x1a5   :  { %v1517_v1 = vpop.eup %1516  ;;  %3014 = vst [vmem:[#allocation61_spill] sm:$0xff] %v2333_v52  ;;  %3015 = vst [vmem:[#allocation62_spill] sm:$0xff] %v2335_v17  ;;  %v236_v26 = vmul.f32 0.6931472, %v1511_v57  ;;  %v145_v51 = vmul.f32 -0.75, %v121_v56  ;;  %v205_v50 = vmul.f32 -0.25, %v133_v43  ;;  %v346_v58 = vsub.f32 %v1747_v18, %v1826_v13 }
 0x1a6   :  { %v180_v14 = vmul.f32 0.6931472, %v1517_v1  ;;  %v240_v5 = vmul.f32 0.6931472, %v1515_v36  ;;  %v2342_v10 = vmul.f32 %v172_v40, %v141_v45  ;;  %v2344_v53 = vmul.f32 %v232_v46, %v201_v34  ;;  %v3032_v17 = vld [vmem:[#allocation28_spill] sm:$0xff]  ;;  %v3033_v52 = vld [vmem:[#allocation18_spill] sm:$0xff] }
 0x1a7   :  { %v2329_v37 = vpop.permute.xlu1 %857  ;;  %v2346_v4 = vmul.f32 -0.25, %v134_v11  ;;  %v1519_v23 = vpop.eup %1518  ;;  %v344_v48 = vsub.f32 %v1749_v19, %v1826_v13  ;;  %v345_v1 = vsub.f32 %v1754_v21, %v1826_v13  ;;  %v421_v57 = vsub.f32 %v1768_v30, %v1819_v62 }
 0x1a8   :  { %v2338_v8 = vpop.permute.xlu0 %997  ;;  %3016 = vst [vmem:[#allocation63_spill] sm:$0xff] %v2342_v10  ;;  %3017 = vst [vmem:[#allocation64_spill] sm:$0xff] %v2344_v53  ;;  %1520 = vlog2.f32 %v218_v49  ;;  %v347_v40 = vsub.f32 %v1752_v20, %v1826_v13  ;;  %v420_v16 = vsub.f32 %v1770_v31, %v1819_v62  ;;  %v2362_v2 = vmul.f32 %v176_v42, %v143_v38  ;;  %v3025_v42 = vld [vmem:[#allocation25_spill] sm:$0xff] }
 0x1a9   :  { %3018 = vst [vmem:[#allocation65_spill] sm:$0xff] %v2346_v4  ;;  %v2364_v36 = vmul.f32 %v236_v26, %v203_v12  ;;  %v349_v19 = vsub.f32 %v1756_v22, %v1826_v13  ;;  %v422_v21 = vsub.f32 %v1772_v32, %v1819_v62  ;;  %v2370_v30 = vmul.f32 %v180_v14, %v145_v51  ;;  %v3026_v12 = vld [vmem:[#allocation11_spill] sm:$0xff] }
 0x1aa   :  { %3020 = vst [vmem:[#allocation67_spill] sm:$0xff] %v2362_v2  ;;  %v2372_v45 = vmul.f32 %v240_v5, %v205_v50  ;;  %v358_v56 = vand.u32 2147483647, %v346_v58  ;;  %v351_v20 = vsub.f32 %v1758_v24, %v1826_v13  ;;  %v2378_v43 = vmul.f32 0.6931472, %v1519_v23  ;;  %v3031_v4 = vld [vmem:[#allocation7_spill] sm:$0xff] }
 0x1ab   :  { %v2348_v25 = vpop.permute.xlu1 %865  ;;  %3021 = vst [vmem:[#allocation68_spill] sm:$0xff] %v2364_v36  ;;  %3022 = vst [vmem:[#allocation69_spill] sm:$0xff] %v2370_v30  ;;  %v356_v34 = vand.u32 2147483647, %v344_v48  ;;  %v357_v46 = vand.u32 2147483647, %v345_v1  ;;  %v423_v22 = vsub.f32 %v1774_v33, %v1819_v62  ;;  %v508_v26 = vsub.f32 %v3026_v12, %v3025_v42 }
 0x1ac   :  { %3019 = vst [vmem:[#allocation66_spill] sm:$0xff] %v2348_v25  ;;  %v2356_v18 = vpop.permute.xlu0 %1005  ;;  %3023 = vst [vmem:[#allocation70_spill] sm:$0xff] %v2372_v45  ;;  %v433_v11 = vand.u32 2147483647, %v421_v57  ;;  %v359_v5 = vand.u32 2147483647, %v347_v40  ;;  %v596_v44 = vsub.f32 %v3033_v52, %v3032_v17 }
 0x1ad   :  { %3024 = vst [vmem:[#allocation71_spill] sm:$0xff] %v2378_v43  ;;  %v432_v58 = vand.u32 2147483647, %v420_v16  ;;  %v1026_v51 = vsub.s32 5, %v1804_v55  ;;  %v361_v49 = vand.u32 2147483647, %v349_v19  ;;  %v425_v43 = vsub.f32 %v3031_v4, %v1819_v62 }
 0x1ae   :  { %v434_v38 = vand.u32 2147483647, %v422_v21  ;;  %v363_v33 = vand.u32 2147483647, %v351_v20  ;;  %v962_v1 = vsub.s32 7, %v1804_v55  ;;  %v1570_v57 = vld [vmem:[%s2917_s2] sm:$0xff]  ;;  %v445_v16 = vadd.f32 %v433_v11, %v357_v46 }
 0x1af   :  { %v753_v40 = vrot.slane %v1570_v57, 6  ;;  %v435_v19 = vand.u32 2147483647, %v423_v22  ;;  %v3028_v21 = vld [vmem:[#allocation12_spill] sm:$0xff]  ;;  %v3029_v12 = vld [vmem:[#allocation13_spill] sm:$0xff]  ;;  %v444_v48 = vadd.f32 %v432_v58, %v356_v34  ;;  %v2411_v13 = vrot.slane %v1570_v57, %v1026_v51  ;;  %v3036_v30 = vld [vmem:[#allocation26_spill] sm:$0xff] }
 0x1b0   :  { %v2382_v32 = vpop.permute.xlu1 %913  ;;  %v2384_v14 = vpop.permute.xlu0 %1013  ;;  %v509_v24 = vsub.f32 %v3028_v21, %v3025_v42  ;;  %v510_v31 = vsub.f32 %v3029_v12, %v3025_v42  ;;  %v446_v46 = vadd.f32 %v434_v38, %v358_v56  ;;  %v3034_v11 = vld [vmem:[#allocation8_spill] sm:$0xff]  ;;  %v520_v21 = vand.u32 2147483647, %v508_v26  ;;  %v3035_v12 = vld [vmem:[#allocation22_spill] sm:$0xff]  ;;  %v3039_v36 = vld [vmem:[#allocation15_spill] sm:$0xff]  ;;  %s1603_s2 = smov [#allocation2]  }
 0x1b1   :  { %v427_v22 = vsub.f32 %v3034_v11, %v1819_v62  ;;  %v597_v23 = vsub.f32 %v3035_v12, %v3032_v17  ;;  %v598_v45 = vsub.f32 %v3036_v30, %v3032_v17  ;;  %v2419_v34 = vrot.slane %v1570_v57, %v962_v1  ;;  %v3037_v56 = vld [vmem:[#allocation14_spill] sm:$0xff]  ;;  %s1373_s9 = sshll.u32 %s1603_s2, 4  ;;  %s1374_s9 = int_to_ptr.vmem [resolvable:$true] %s1373_s9 }
 0x1b2   :  { %v1115_v4 = vmin.f32 %v2311_v60, %v2411_v13  ;;  %v755_v58 = vsub.f32 %v1570_v57, %v753_v40  ;;  %v447_v52 = vadd.f32 %v435_v19, %v359_v5  ;;  %v521_v51 = vand.u32 2147483647, %v509_v24  ;;  %s1571_s10 = scalar_lea.vmem %s1374_s9, 1536  ;;  %p1576_p1 = scmp.lt.s32.totalorder %s1374_s9, %s1374_s9 }
 0x1b3   :  { %v522_v2 = vand.u32 2147483647, %v510_v31  ;;  %v511_v38 = vsub.f32 %v3037_v56, %v3025_v42  ;;  %v437_v12 = vand.u32 2147483647, %v425_v43  ;;  %v513_v30 = vsub.f32 %v3039_v36, %v3025_v42  ;;  %v3040_v31 = vld [vmem:[#allocation20_spill] sm:$0xff]  ;;  %v3041_v36 = vld [vmem:[#allocation9_spill] sm:$0xff]  ;;  %p1572_p0 = scmp.ne.s32.totalorder %s1374_s9, %s1571_s10  ;;  %p1577_p2 = scmp.lt.s32.totalorder %s1571_s10, %s1571_s10 }
 0x1b4   :  { %v2403_v50 = vpop.permute.xlu1 %921  ;;  %v2405_v20 = vpop.permute.xlu0 %1021  ;;  %v608_v1 = vand.u32 2147483647, %v596_v44  ;;  %v439_v5 = vand.u32 2147483647, %v427_v22  ;;  %v532_v24 = vadd.f32 %v520_v21, %v444_v48  ;;  %v599_v57 = vsub.f32 %v3040_v31, %v3032_v17  ;;  %v3042_v21 = vld [vmem:[#allocation39_spill] sm:$0xff] }
 0x1b5   :  { %3030 = vst [vmem:[#allocation11_spill] sm:$0xff] %v2403_v50  ;;  %v2427_v26 = vpop.eup %1520  ;;  %v609_v40 = vand.u32 2147483647, %v597_v23  ;;  %v610_v19 = vand.u32 2147483647, %v598_v45  ;;  %v1117_v56 = vmin.f32 %v2338_v8, %v2411_v13  ;;  %v429_v44 = vsub.f32 %v3041_v36, %v1819_v62  ;;  %v3043_v36 = vld [vmem:[#allocation23_spill] sm:$0xff]  ;;  %p1578_p3 = por %p1577_p2, %p1576_p1 }
 0x1b6   :  { %3038 = vst [vmem:[#allocation12_spill] sm:$0xff] %v2427_v26  ;;  %v757_v26 = vrot.slane %v755_v58, 1  ;;  %v533_v7 = vadd.f32 %v521_v51, %v445_v16  ;;  %v534_v28 = vadd.f32 %v522_v2, %v446_v46  ;;  %v523_v27 = vand.u32 2147483647, %v511_v38 }
 0x1b7   :  { %v525_v22 = vand.u32 2147483647, %v513_v30  ;;  %v620_v48 = vadd.f32 %v608_v1, %v532_v24  ;;  %v601_v16 = vsub.f32 %v3043_v36, %v3032_v17  ;;  %v2452_v2 = vadd.f32 %v439_v5, %v363_v33  ;;  %v3066_v1 = vld [vmem:[#allocation37_spill] sm:$0xff]  ;;  %p1579_p4 = pnand %p1578_p3, %p1572_p0 }
 0x1b8   :  { %v2425_v11 = vpop.permute.xlu1 %925  ;;  %v621_v31 = vadd.f32 %v609_v40, %v533_v7  ;;  %v622_v46 = vadd.f32 %v610_v19, %v534_v28  ;;  %v759_v38 = vmul.f32 %v757_v26, %v755_v58  ;;  %v2454_v30 = vand.u32 2147483647, %v429_v44  ;;  %v3050_v26 = vld [vmem:[#allocation41_spill] sm:$0xff]  ;;  %v3056_v44 = vld [vmem:[#allocation36_spill] sm:$0xff] }
 0x1b9   :  { %v1103_v10 = vmax.f32 %v2425_v11, %v2419_v34  ;;  %v2433_v53 = vpop.permute.xlu0 %765  ;;  %3044 = vst [vmem:[#allocation13_spill] sm:$0xff] %v2452_v2  ;;  %v3049_v28 = vsub.f32 %v2185_v47, %v2166_v41  ;;  %v2483_v19 = vand.u32 2147483647, %v601_v16  ;;  %v3054_v41 = vsub.f32 %v2291_v9, %v2289_v59  ;;  %v3060_v9 = vld [vmem:[#allocation42_spill] sm:$0xff]  ;;  %v3067_v2 = vld [vmem:[#allocation52_spill] sm:$0xff] }
 0x1ba   :  { %3045 = vst [vmem:[#allocation7_spill] sm:$0xff] %v2454_v30  ;;  %v1100_v36 = vmax.f32 %v2382_v32, %v2419_v34  ;;  %v1077_v24 = vmin.f32 %v2241_v35, %v2062_v3 }
 0x1bb   :  { %v1127_v43 = vsub.f32 %v1103_v10, %v1115_v4  ;;  %v449_v10 = vadd.f32 %v437_v12, %v361_v49  ;;  %v611_v4 = vand.u32 2147483647, %v599_v57  ;;  %v3048_v12 = vld [vmem:[#allocation16_spill] sm:$0xff]  ;;  %v2469_v58 = vadd.f32 %v620_v48, %v3049_v28  ;;  %3053 = vst [vmem:[#allocation8_spill] sm:$0xff] %v2483_v19  ;;  %v3057_v48 = vld [vmem:[#allocation38_spill] sm:$0xff] }
 0x1bc   :  { %v2441_v50 = vpop.permute.xlu1 %933  ;;  %v2490_v47 = vadd.f32 %v622_v46, %v3054_v41  ;;  %v965_v46 = vmin.f32 %v3060_v9, %v2419_v34  ;;  %v1123_v28 = vmin.f32 %v2405_v20, %v2411_v13 }
 0x1bd   :  { %v2444_v25 = vmul.f32 %v1127_v43, %v3042_v21  ;;  %v1105_v45 = vmax.f32 %v2441_v50, %v2419_v34  ;;  %v2448_v23 = vpop.permute.xlu0 %777  ;;  %v535_v43 = vadd.f32 %v523_v27, %v447_v52  ;;  %v1119_v21 = vmin.f32 %v2356_v18, %v2411_v13 }
 0x1be   :  { %v2462_v7 = vadd.f32 %v525_v22, %v449_v10  ;;  %v3052_v52 = vsub.f32 %v2249_v15, %v2247_v54  ;;  %3055 = vst [vmem:[#allocation22_spill] sm:$0xff] %v2490_v47  ;;  %v3058_v10 = vsub.s32 6, %v1804_v55  ;;  %v3059_v15 = vld [vmem:[#allocation40_spill] sm:$0xff]  ;;  %v1121_v55 = vmin.f32 %v2384_v14, %v2411_v13 }
 0x1bf   :  { %v1129_v51 = vsub.f32 %v1105_v45, %v1117_v56  ;;  %v2476_v27 = vadd.f32 %v611_v4, %v535_v43  ;;  %v3061_v43 = vld [vmem:[#allocation46_spill] sm:$0xff] }
 0x1c0   :  { %v2460_v49 = vpop.permute.xlu1 %941  ;;  %3047 = vst [vmem:[#allocation28_spill] sm:$0xff] %v2462_v7  ;;  %v2481_v40 = vadd.f32 %v621_v31, %v3052_v52  ;;  %v2496_v4 = vrot.slane %v759_v38, %v3058_v10  ;;  %v1112_v31 = vmin.f32 %v2287_v61, %v2411_v13  ;;  %v1031_v52 = vmax.f32 %v2311_v60, %v2411_v13 }
 0x1c1   :  { %v2472_v5 = vmul.f32 %v1129_v51, %v3050_v26  ;;  %v2474_v57 = vpop.permute.xlu0 %785  ;;  %3051 = vst [vmem:[#allocation18_spill] sm:$0xff] %v2476_v27  ;;  %v1107_v56 = vmax.f32 %v2460_v49, %v2419_v34  ;;  %v1101_v51 = vmax.f32 %v3060_v9, %v2419_v34  ;;  %v3062_v26 = vld [vmem:[#allocation50_spill] sm:$0xff]  ;;  %v877_v9 = vmax.f32 %v2241_v35, %v2062_v3 }
 0x1c2   :  { %v967_v35 = vmin.f32 %v2425_v11, %v2419_v34  ;;  %v1080_v60 = vmin.f32 %v2285_v39, %v2062_v3 }
 0x1c3   :  { %v1131_v16 = vsub.f32 %v1107_v56, %v1119_v21  ;;  %v3063_v56 = vld [vmem:[#allocation44_spill] sm:$0xff]  ;;  %v1028_v21 = vmax.f32 %v2287_v61, %v2411_v13 }
 0x1c4   :  { %v2503_v59 = vpop.permute.xlu1 %949 }
 0x1c5   :  { %v1109_v38 = vmax.f32 %v2503_v59, %v2419_v34  ;;  %v2520_v41 = vmul.f32 %v1131_v16, %v3063_v56  ;;  %v2528_v54 = vpop.permute.xlu0 %793  ;;  %v964_v16 = vmin.f32 %v2382_v32, %v2419_v34  ;;  %v1124_v56 = vsub.f32 %v1100_v36, %v1112_v31  ;;  %v3065_v36 = vld [vmem:[#allocation35_spill] sm:$0xff] }
 0x1c6   :  { %v813_v45 = vmin.f32 %v2433_v53, %v3065_v36  ;;  %v882_v32 = vmax.f32 %v2303_v6, %v2062_v3  ;;  %v1065_v62 = vmax.f32 %v2433_v53, %v3065_v36 }
 0x1c7   :  { %v1133_v33 = vsub.f32 %v1109_v38, %v1121_v55  ;;  %v3064_v55 = vld [vmem:[#allocation49_spill] sm:$0xff]  ;;  %v1040_v11 = vsub.f32 %v964_v16, %v1028_v21  ;;  %v2569_v30 = vmul.f32 %v1124_v56, %v3066_v1  ;;  %v1033_v1 = vmax.f32 %v2338_v8, %v2411_v13 }
 0x1c8   :  { %v2536_v10 = vpop.permute.xlu1 %957  ;;  %v889_v7 = vsub.f32 %v813_v45, %v877_v9  ;;  %v1089_v45 = vsub.f32 %v1065_v62, %v1077_v24  ;;  %v969_v21 = vmin.f32 %v2441_v50, %v2419_v34  ;;  %v3069_v62 = vld [vmem:[#allocation11_spill] sm:$0xff] }
 0x1c9   :  { %v2543_v38 = vmul.f32 %v1133_v33, %v3064_v55  ;;  %v1111_v61 = vmax.f32 %v2536_v10, %v2419_v34  ;;  %v880_v55 = vmax.f32 %v2285_v39, %v2062_v3  ;;  %v1043_v33 = vsub.f32 %v967_v35, %v1031_v52 }
 0x1ca   :  { %v1052_v56 = vmax.f32 %v1040_v11, 0.0  ;;  %v1296_v35 = vadd.f32 1e-07, %v2569_v30  ;;  %v2620_v52 = vsub.f32 %v969_v21, %v1033_v1  ;;  %v1070_v1 = vmax.f32 %v2474_v57, %v3065_v36 }
 0x1cb   :  { %v1135_v22 = vsub.f32 %v1111_v61, %v1123_v28  ;;  %v2574_v28 = vpop.permute.xlu0 %801  ;;  %v1055_v53 = vmax.f32 %v1043_v33, 0.0 }
 0x1cc   :  { %1522 = vrcp.f32 %v1296_v35 }
 0x1cd   :  { %v2572_v19 = vmul.f32 %v1135_v22, %v3067_v2  ;;  %v982_v39 = vpop.permute.xlu1 %981  ;;  %v3068_v2 = vld [vmem:[#allocation66_spill] sm:$0xff]  ;;  %v901_v22 = vmax.f32 %v889_v7, 0.0  ;;  %v1068_v7 = vmax.f32 %v2448_v23, %v3065_v36 }
 0x1ce   :  { %v1029_v31 = vmax.f32 %v982_v39, %v2411_v13  ;;  %v1113_v27 = vmin.f32 %v982_v39, %v2411_v13 }
 0x1cf   :  { %v1156_v8 = vpop.permute.xlu0 %1155 }
 0x1d0   :  { %v1041_v9 = vsub.f32 %v965_v46, %v1029_v31  ;;  %v1125_v16 = vsub.f32 %v1101_v51, %v1113_v27  ;;  %v1102_v27 = vmax.f32 %v3069_v62, %v2419_v34  ;;  %v816_v46 = vmin.f32 %v2448_v23, %v3065_v36 }
 0x1d1   :  { %v2593_v61 = vpop.permute.xlu1 %985  ;;  %v1213_v11 = vadd.f32 %v2496_v4, %v1156_v8  ;;  %v818_v23 = vmin.f32 %v2474_v57, %v3065_v36 }
 0x1d2   :  { %v1053_v47 = vmax.f32 %v1041_v9, 0.0  ;;  %v2597_v42 = vmul.f32 %v1125_v16, %v1089_v45  ;;  %v1114_v51 = vmin.f32 %v2593_v61, %v2411_v13  ;;  %v1299_v45 = vadd.f32 1e-07, %v2444_v25 }
 0x1d3   :  { %v3070_v16 = vmax.f32 %v3056_v44, 0.0 }
 0x1d4   :  { %v1297_v50 = vadd.f32 1e-07, %v2597_v42  ;;  %v2610_v31 = vmul.f32 %v1053_v47, %v901_v22  ;;  %v3071_v22 = vmax.f32 %v3057_v48, 0.0  ;;  %v1126_v8 = vsub.f32 %v1102_v27, %v1114_v51 }
 0x1d5   :  { %v994_v9 = vpop.permute.xlu1 %993  ;;  %v2618_v39 = vmul.f32 %v1052_v56, %v3070_v16  ;;  %v892_v56 = vsub.f32 %v816_v46, %v880_v55  ;;  %v1092_v16 = vsub.f32 %v1068_v7, %v1080_v60  ;;  %v3072_v48 = vmin.f32 %v3061_v43, %v2419_v34  ;;  %v3074_v7 = vld [vmem:[#allocation55_spill] sm:$0xff] }
 0x1d6   :  { %v2625_v47 = vsub.f32 %v1213_v11, %v2610_v31  ;;  %v2629_v35 = vmul.f32 %v1055_v53, %v3071_v22  ;;  %1524 = vrcp.f32 %v1297_v50  ;;  %v1032_v33 = vmax.f32 %v994_v9, %v2411_v13 }
 0x1d7   :  { %v1116_v44 = vmin.f32 %v994_v9, %v2411_v13  ;;  %1526 = vrcp.f32 %v1299_v45  ;;  %v1301_v11 = vadd.f32 1e-07, %v2472_v5  ;;  %v3073_v27 = vmax.f32 %v3061_v43, %v2419_v34 }
 0x1d8   :  { %v1237_v21 = vadd.f32 1e-07, %v2625_v47  ;;  %v1044_v53 = vsub.f32 %v3072_v48, %v1032_v33  ;;  %v894_v9 = vsub.f32 %v818_v23, %v882_v32  ;;  %v2649_v45 = vmul.f32 %v1126_v8, %v3074_v7 }
 0x1d9   :  { %v1128_v51 = vsub.f32 %v3073_v27, %v1116_v44  ;;  %v1002_v50 = vpop.permute.xlu1 %1001  ;;  %v904_v22 = vmax.f32 %v892_v56, 0.0  ;;  %v3075_v43 = vmin.f32 %v2303_v6, %v2062_v3  ;;  %v3076_v44 = vmax.f32 %v3062_v26, %v2419_v34  ;;  %v1523_v24 = vpop.eup %1522 }
 0x1da   :  { %1528 = vrcp.f32 %v1237_v21  ;;  %v1034_v60 = vmax.f32 %v1002_v50, %v2411_v13  ;;  %v1118_v57 = vmin.f32 %v1002_v50, %v2411_v13  ;;  %v1056_v23 = vmax.f32 %v1044_v53, 0.0 }
 0x1db   :  { %v2651_v33 = vmul.f32 %v1128_v51, %v1092_v16  ;;  %v1094_v32 = vsub.f32 %v1070_v1, %v3075_v43  ;;  %1530 = vrcp.f32 %v1301_v11  ;;  %v820_v48 = vmin.f32 %v2528_v54, %v3065_v36 }
 0x1dc   :  { %v1130_v21 = vsub.f32 %v3076_v44, %v1118_v57  ;;  %v1072_v8 = vmax.f32 %v2528_v54, %v3065_v36  ;;  %v3077_v16 = vmin.f32 %v3062_v26, %v2419_v34  ;;  %v906_v51 = vmax.f32 %v894_v9, 0.0 }
 0x1dd   :  { %v1010_v27 = vpop.permute.xlu1 %1009  ;;  %v1030_v6 = vmax.f32 %v2593_v61, %v2411_v13  ;;  %v2671_v11 = vadd.f32 1e-07, %v2520_v41  ;;  %v1298_v54 = vadd.f32 1e-07, %v2649_v45  ;;  %v1300_v26 = vadd.f32 1e-07, %v2651_v33 }
 0x1de   :  { %v1046_v56 = vsub.f32 %v3077_v16, %v1034_v60  ;;  %v1036_v1 = vmax.f32 %v1010_v27, %v2411_v13  ;;  %v1120_v53 = vmin.f32 %v1010_v27, %v2411_v13  ;;  %v2677_v57 = vmul.f32 %v1130_v21, %v1094_v32 }
 0x1df   :  { %v1171_v60 = vpop.permute.xlu0 %1170  ;;  %v3078_v61 = vmin.f32 %v2243_v29, %v2419_v34  ;;  %v2682_v7 = vmul.f32 %v1056_v23, %v904_v22  ;;  %v3079_v44 = vmax.f32 %v2329_v37, %v2062_v3  ;;  %v3080_v27 = vmin.f32 %v2329_v37, %v2062_v3 }
 0x1e0   :  { %v1216_v43 = vadd.f32 %v2496_v4, %v1171_v60  ;;  %v1058_v55 = vmax.f32 %v1046_v56, 0.0  ;;  %v3081_v32 = vmax.f32 %v2243_v29, %v2419_v34  ;;  %v822_v22 = vmin.f32 %v2574_v28, %v3065_v36 }
 0x1e1   :  { %v1048_v9 = vsub.f32 %v3078_v61, %v1036_v1  ;;  %v896_v16 = vsub.f32 %v820_v48, %v3079_v44  ;;  %v1096_v50 = vsub.f32 %v1072_v8, %v3080_v27  ;;  %v1018_v46 = vpop.permute.xlu1 %1017  ;;  %v1074_v23 = vmax.f32 %v2574_v28, %v3065_v36 }
 0x1e2   :  { %v1132_v21 = vsub.f32 %v3081_v32, %v1120_v53  ;;  %v3082_v48 = vmin.f32 %v3069_v62, %v2419_v34  ;;  %v2702_v37 = vsub.f32 %v1216_v43, %v2682_v7  ;;  %v1285_v8 = vsub.f32 %v2597_v42, %v2625_v47 }
 0x1e3   :  { %1532 = vrcp.f32 %v1298_v54  ;;  %v1038_v29 = vmax.f32 %v1018_v46, %v2411_v13  ;;  %v1122_v56 = vmin.f32 %v1018_v46, %v2411_v13  ;;  %v1181_v53 = vpop.permute.xlu0 %1180  ;;  %v1525_v60 = vpop.eup %1524  ;;  %v1302_v36 = vadd.f32 1e-07, %v2677_v57 }
 0x1e4   :  { %v1042_v1 = vsub.f32 %v3082_v48, %v1030_v6  ;;  %1534 = vrcp.f32 %v1300_v26  ;;  %v1060_v28 = vmax.f32 %v1048_v9, 0.0  ;;  %v1240_v62 = vadd.f32 1e-07, %v2702_v37  ;;  %v2718_v54 = vpop.eup %1526 }
 0x1e5   :  { %v2710_v6 = vmul.f32 %v1132_v21, %v1096_v50  ;;  %v3083_v61 = vmax.f32 %v2266_v0, %v2419_v34  ;;  %v2715_v42 = vmul.f32 %v1058_v55, %v906_v51  ;;  %v1218_v47 = vadd.f32 %v2496_v4, %v1181_v53 }
 0x1e6   :  { %v908_v46 = vmax.f32 %v896_v16, 0.0  ;;  %v3084_v26 = vmax.f32 %v3068_v2, %v2062_v3  ;;  %v3085_v9 = vmin.f32 %v3068_v2, %v2062_v3  ;;  %v3086_v27 = vmin.f32 %v2266_v0, %v2419_v34  ;;  %v1151_v21 = vpop.permute.xlu1 %1150 }
 0x1e7   :  { %v1134_v43 = vsub.f32 %v3083_v61, %v1122_v56  ;;  %v1529_v55 = vpop.eup %1528  ;;  %v1321_v51 = vmul.f32 %v1525_v60, %v1285_v8  ;;  %v1054_v48 = vmax.f32 %v1042_v1, 0.0  ;;  %1536 = vrcp.f32 %v1240_v62  ;;  %v1191_v16 = vpop.permute.xlu0 %1190 }
 0x1e8   :  { %v898_v44 = vsub.f32 %v822_v22, %v3084_v26  ;;  %v1098_v50 = vsub.f32 %v1074_v23, %v3085_v9  ;;  %v1050_v32 = vsub.f32 %v3086_v27, %v1038_v29  ;;  %v2730_v56 = vsub.f32 %v1218_v47, %v2715_v42  ;;  %v2741_v1 = vpop.eup %1530 }
 0x1e9   :  { %v1261_v53 = vmul.f32 %v1529_v55, %v2610_v31  ;;  %v1212_v22 = vadd.f32 %v2496_v4, %v1151_v21  ;;  %v2734_v61 = vmul.f32 %v1060_v28, %v908_v46  ;;  %v1220_v3 = vadd.f32 %v2496_v4, %v1191_v16 }
 0x1ea   :  { %1538 = vrcp.f32 %v1302_v36  ;;  %v1304_v0 = vadd.f32 1e-07, %v2710_v6  ;;  %v2738_v2 = vmul.f32 %v1134_v43, %v1098_v50  ;;  %v1242_v23 = vadd.f32 1e-07, %v2730_v56  ;;  %v1161_v28 = vpop.permute.xlu1 %1160 }
 0x1eb   :  { %v1333_v8 = vsub.f32 %v1261_v53, %v1321_v51  ;;  %v1062_v29 = vmax.f32 %v1050_v32, 0.0  ;;  %v1224_v60 = vsub.f32 %v1212_v22, %v2618_v39  ;;  %v2745_v31 = vsub.f32 %v1220_v3, %v2734_v61  ;;  %v1201_v26 = vpop.permute.xlu0 %1200 }
 0x1ec   :  { %v1305_v62 = vadd.f32 1e-07, %v2543_v38  ;;  %v910_v47 = vmax.f32 %v898_v44, 0.0  ;;  %v3087_v36 = vmax.f32 %v2279_v63, 0.0  ;;  %v1214_v43 = vadd.f32 %v2496_v4, %v1161_v28 }
 0x1ed   :  { %v1345_v9 = vsub.f32 %v2481_v40, %v1333_v8  ;;  %1540 = vrcp.f32 %v1242_v23  ;;  %v1236_v50 = vadd.f32 1e-07, %v1224_v60  ;;  %v1284_v27 = vsub.f32 %v2569_v30, %v1224_v60 }
 0x1ee   :  { %v2750_v46 = vmul.f32 %v1054_v48, %v3087_v36  ;;  %1542 = vrcp.f32 %v1304_v0  ;;  %v1306_v32 = vadd.f32 1e-07, %v2738_v2  ;;  %v1244_v21 = vadd.f32 1e-07, %v2745_v31  ;;  %v1166_v40 = vpop.permute.xlu1 %1165 }
 0x1ef   :  { %1357 = vst [vmem:[#allocation2 + $0x8] sm:$0xff] %v1345_v9  ;;  %1544 = vrcp.f32 %v1236_v50  ;;  %v2758_v63 = vmul.f32 %v1523_v24, %v1284_v27  ;;  %v2760_v55 = vmul.f32 %v1062_v29, %v910_v47  ;;  %v1222_v51 = vadd.f32 %v2496_v4, %v1201_v26 }
 0x1f0   :  { %v1226_v44 = vsub.f32 %v1214_v43, %v2750_v46  ;;  %1546 = vrcp.f32 %v1244_v21  ;;  %v1215_v16 = vadd.f32 %v2496_v4, %v1166_v40  ;;  %v1533_v53 = vpop.eup %1532  ;;  %v3088_v22 = vmax.f32 %v2356_v18, %v2411_v13  ;;  %v3097_v21 = vld [vmem:[#allocation31_spill] sm:$0xff] }
 0x1f1   :  { %v3089_v3 = vmin.f32 %v2460_v49, %v2419_v34  ;;  %1548 = vrcp.f32 %v2671_v11  ;;  %v2773_v0 = vsub.f32 %v1222_v51, %v2760_v55  ;;  %v3090_v23 = vmax.f32 %v3059_v15, 0.0  ;;  %v1535_v29 = vpop.eup %1534  ;;  %v3098_v51 = vld [vmem:[#allocation43_spill] sm:$0xff] }
 0x1f2   :  { %v1238_v48 = vadd.f32 1e-07, %v1226_v44  ;;  %v1286_v30 = vsub.f32 %v2649_v45, %v1226_v44  ;;  %v3091_v8 = vmax.f32 %v2620_v52, 0.0  ;;  %v3092_v60 = vmax.f32 %v2384_v14, %v2411_v13  ;;  %v1176_v36 = vpop.permute.xlu1 %1175 }
 0x1f3   :  { %v1047_v24 = vsub.f32 %v3089_v3, %v3088_v22  ;;  %v3093_v18 = vmin.f32 %v2503_v59, %v2419_v34  ;;  %v1227_v11 = vsub.f32 %v1215_v16, %v2629_v35  ;;  %v975_v15 = vmin.f32 %v2536_v10, %v2419_v34 }
 0x1f4   :  { %v2779_v45 = vmul.f32 %v3091_v8, %v3090_v23  ;;  %1550 = vrcp.f32 %v1238_v48  ;;  %v2787_v28 = vmul.f32 %v1533_v53, %v1286_v30  ;;  %v1288_v52 = vsub.f32 %v2651_v33, %v2702_v37  ;;  %v1537_v26 = vpop.eup %1536  ;;  %v3101_v23 = vld [vmem:[#allocation63_spill] sm:$0xff] }
 0x1f5   :  { %v1049_v49 = vsub.f32 %v3093_v18, %v3092_v60  ;;  %1552 = vrcp.f32 %v1306_v32  ;;  %v1246_v47 = vadd.f32 1e-07, %v2773_v0  ;;  %v1239_v14 = vadd.f32 1e-07, %v1227_v11  ;;  %v3095_v32 = vld [vmem:[#allocation57_spill] sm:$0xff] }
 0x1f6   :  { %1554 = vrcp.f32 %v1305_v62  ;;  %v1287_v59 = vsub.f32 %v2444_v25, %v1227_v11  ;;  %v1217_v43 = vadd.f32 %v2496_v4, %v1176_v36  ;;  %v1059_v9 = vmax.f32 %v1047_v24, 0.0  ;;  %v3094_v62 = vld [vmem:[#allocation58_spill] sm:$0xff]  ;;  %v3100_v24 = vld [vmem:[#allocation64_spill] sm:$0xff]  ;;  %v3106_v36 = vld [vmem:[#allocation67_spill] sm:$0xff] }
 0x1f7   :  { %v1307_v50 = vadd.f32 1e-07, %v2572_v19  ;;  %v1324_v27 = vmul.f32 %v1535_v29, %v1288_v52  ;;  %1556 = vrcp.f32 %v1246_v47  ;;  %v1264_v34 = vmul.f32 %v1537_v26, %v2682_v7  ;;  %v1539_v37 = vpop.eup %1538  ;;  %v1186_v7 = vpop.permute.xlu1 %1185  ;;  %v3103_v29 = vld [vmem:[#allocation32_spill] sm:$0xff] }
 0x1f8   :  { %1558 = vrcp.f32 %v1239_v14  ;;  %v2800_v10 = vmul.f32 %v2718_v54, %v1287_v59  ;;  %v1229_v33 = vsub.f32 %v1217_v43, %v2779_v45  ;;  %v3096_v25 = vsub.f32 %v3094_v62, %v3095_v32  ;;  %v3105_v47 = vld [vmem:[#allocation68_spill] sm:$0xff]  ;;  %v3108_v59 = vld [vmem:[#allocation33_spill] sm:$0xff] }
 0x1f9   :  { %v907_v40 = vmax.f32 %v3098_v51, 0.0  ;;  %v1061_v48 = vmax.f32 %v1049_v49, 0.0  ;;  %v3099_v30 = vmax.f32 %v2405_v20, %v2411_v13  ;;  %v1336_v53 = vsub.f32 %v1264_v34, %v1324_v27  ;;  %v3104_v20 = vld [vmem:[#allocation48_spill] sm:$0xff] }
 0x1fa   :  { %v636_v44 = vadd.f32 %v3097_v21, %v3096_v25  ;;  %v1241_v22 = vadd.f32 1e-07, %v1229_v33  ;;  %v1289_v54 = vsub.f32 %v2472_v5, %v1229_v33  ;;  %v1219_v3 = vadd.f32 %v2496_v4, %v1186_v7  ;;  %v1541_v13 = vpop.eup %1540 }
 0x1fb   :  { %v1051_v16 = vsub.f32 %v975_v15, %v3099_v30  ;;  %v3102_v8 = vsub.f32 %v3100_v24, %v3101_v23  ;;  %1560 = vrcp.f32 %v1307_v50  ;;  %v1290_v18 = vsub.f32 %v2677_v57, %v2730_v56  ;;  %v1543_v52 = vpop.eup %1542  ;;  %v1196_v56 = vpop.permute.xlu1 %1195 }
 0x1fc   :  { %v2819_v49 = vmul.f32 %v1059_v9, %v907_v40  ;;  %v909_v11 = vmax.f32 %v3104_v20, 0.0  ;;  %v1348_v15 = vsub.f32 %v636_v44, %v1336_v53  ;;  %1562 = vrcp.f32 %v1241_v22  ;;  %v1545_v9 = vpop.eup %1544  ;;  %v3109_v44 = vld [vmem:[#allocation51_spill] sm:$0xff] }
 0x1fd   :  { %v638_v60 = vadd.f32 %v3103_v29, %v3102_v8  ;;  %v2823_v5 = vmul.f32 %v2741_v1, %v1289_v54  ;;  %v3107_v14 = vsub.f32 %v3105_v47, %v3106_v36  ;;  %v1266_v26 = vmul.f32 %v1541_v13, %v2715_v42  ;;  %v1547_v62 = vpop.eup %1546  ;;  %v3114_v47 = vld [vmem:[#allocation22_spill] sm:$0xff] }
 0x1fe   :  { %v1326_v50 = vmul.f32 %v1539_v37, %v1290_v18  ;;  %v1231_v57 = vsub.f32 %v1219_v3, %v2819_v49  ;;  %v1063_v27 = vmax.f32 %v1051_v16, 0.0  ;;  %1360 = vst [vmem:[#allocation2 + $0x20] sm:$0xff] %v1348_v15  ;;  %v1292_v34 = vsub.f32 %v2710_v6, %v2745_v31  ;;  %v1549_v37 = vpop.eup %1548 }
 0x1ff   :  { %v640_v43 = vadd.f32 %v3108_v59, %v3107_v14  ;;  %v2833_v1 = vmul.f32 %v1061_v48, %v909_v11  ;;  %v1221_v33 = vadd.f32 %v2496_v4, %v1196_v56  ;;  %v1260_v25 = vmul.f32 %v1545_v9, %v2618_v39  ;;  %v1206_v53 = vpop.permute.xlu1 %1205  ;;  %v3115_v59 = vld [vmem:[#allocation70_spill] sm:$0xff] }
 0x200   :  { %v1338_v32 = vsub.f32 %v1266_v26, %v1326_v50  ;;  %v1243_v21 = vadd.f32 1e-07, %v1231_v57  ;;  %v1291_v42 = vsub.f32 %v2520_v41, %v1231_v57  ;;  %v911_v51 = vmax.f32 %v3109_v44, 0.0  ;;  %v3118_v50 = vld [vmem:[#allocation34_spill] sm:$0xff] }
 0x201   :  { %v1268_v40 = vmul.f32 %v1547_v62, %v2734_v61  ;;  %v1328_v30 = vmul.f32 %v1543_v52, %v1292_v34  ;;  %v1233_v16 = vsub.f32 %v1221_v33, %v2833_v1  ;;  %v1551_v6 = vpop.eup %1550  ;;  %v1332_v48 = vsub.f32 %v1260_v25, %v2758_v63  ;;  %v3113_v52 = vld [vmem:[#allocation17_spill] sm:$0xff]  ;;  %v3122_v62 = vld [vmem:[#allocation18_spill] sm:$0xff]  ;;  %v3123_v25 = vld [vmem:[#allocation28_spill] sm:$0xff] }
 0x202   :  { %v1350_v31 = vsub.f32 %v638_v60, %v1338_v32  ;;  %1564 = vrcp.f32 %v1243_v21  ;;  %v2842_v7 = vmul.f32 %v1549_v37, %v1291_v42  ;;  %v1553_v39 = vpop.eup %1552  ;;  %v1262_v41 = vmul.f32 %v1551_v6, %v2750_v46  ;;  %v3120_v34 = vld [vmem:[#allocation45_spill] sm:$0xff]  ;;  %v3124_v21 = vld [vmem:[#allocation8_spill] sm:$0xff] }
 0x203   :  { %v1340_v22 = vsub.f32 %v1268_v40, %v1328_v30  ;;  %v1245_v54 = vadd.f32 1e-07, %v1233_v16  ;;  %v1293_v3 = vsub.f32 %v2543_v38, %v1233_v16  ;;  %v1555_v24 = vpop.eup %1554  ;;  %v1344_v61 = vsub.f32 %v2469_v58, %v1332_v48  ;;  %v3110_v38 = vld [vmem:[#allocation27_spill] sm:$0xff]  ;;  %v3126_v16 = vld [vmem:[#allocation5_spill] sm:$0xff]  ;;  %v3127_v6 = vld [vmem:[#allocation24_spill] sm:$0xff] }
 0x204   :  { %1362 = vst [vmem:[#allocation2 + $0x30] sm:$0xff] %v1350_v31  ;;  %v1294_v23 = vsub.f32 %v2738_v2, %v2773_v0  ;;  %v2849_v8 = vmul.f32 %v1063_v27, %v911_v51  ;;  %v1223_v63 = vadd.f32 %v2496_v4, %v1206_v53  ;;  %v1557_v29 = vpop.eup %1556  ;;  %v1334_v18 = vsub.f32 %v1262_v41, %v2787_v28  ;;  %v3111_v0 = vld [vmem:[#allocation25_spill] sm:$0xff]  ;;  %v3129_v41 = vld [vmem:[#allocation6_spill] sm:$0xff] }
 0x205   :  { %v1352_v60 = vsub.f32 %v640_v43, %v1340_v22  ;;  %1566 = vrcp.f32 %v1245_v54  ;;  %v2853_v46 = vmul.f32 %v1555_v24, %v1293_v3  ;;  %v1559_v13 = vpop.eup %1558  ;;  %v603_v20 = vsub.f32 %v3110_v38, %v3032_v17  ;;  %1356 = vst [vmem:[#allocation2] sm:$0xff] %v1344_v61  ;;  %v3116_v43 = vld [vmem:[#allocation69_spill] sm:$0xff] }
 0x206   :  { %v1270_v58 = vmul.f32 %v1557_v29, %v2760_v55  ;;  %v1330_v11 = vmul.f32 %v1553_v39, %v1294_v23  ;;  %v1235_v2 = vsub.f32 %v1223_v63, %v2849_v8  ;;  %v3112_v4 = vsub.f32 %v3048_v12, %v3111_v0  ;;  %v3119_v12 = vld [vmem:[#allocation47_spill] sm:$0xff]  ;;  %v3130_v3 = vld [vmem:[#allocation13_spill] sm:$0xff]  ;;  %v3132_v23 = vld [vmem:[#allocation12_spill] sm:$0xff] }
 0x207   :  { %v517_v28 = vsub.f32 %v3113_v52, %v3111_v0  ;;  %1364 = vst [vmem:[#allocation2 + $0x40] sm:$0xff] %v1352_v60  ;;  %v1346_v36 = vsub.f32 %v3114_v47, %v1334_v18  ;;  %v1263_v14 = vmul.f32 %v1559_v13, %v2629_v35  ;;  %v3117_v26 = vsub.f32 %v3115_v59, %v3116_v43  ;;  %v3125_v35 = vld [vmem:[#allocation29_spill] sm:$0xff]  ;;  %v3133_v29 = vld [vmem:[#allocation7_spill] sm:$0xff]  ;;  %v3134_v18 = vld [vmem:[#allocation54_spill] sm:$0xff] }
 0x208   :  { %v527_v15 = vand.u32 2147483647, %v3112_v4  ;;  %v1342_v57 = vsub.f32 %v1270_v58, %v1330_v11  ;;  %v1247_v56 = vadd.f32 1e-07, %v1235_v2  ;;  %v1295_v9 = vsub.f32 %v2572_v19, %v1235_v2  ;;  %v1561_v27 = vpop.eup %1560  ;;  %v3135_v13 = vld [vmem:[#allocation53_spill] sm:$0xff]  ;;  %v3137_v11 = vld [vmem:[#allocation10_spill] sm:$0xff] }
 0x209   :  { %v642_v55 = vadd.f32 %v3118_v50, %v3117_v26  ;;  %v3121_v33 = vsub.f32 %v3119_v12, %v3120_v34  ;;  %v625_v42 = vadd.f32 %v3124_v21, %v3123_v25  ;;  %v605_v37 = vsub.f32 %v3125_v35, %v3032_v17  ;;  %1358 = vst [vmem:[#allocation2 + $0x10] sm:$0xff] %v1346_v36  ;;  %v1563_v51 = vpop.eup %1562  ;;  %v3138_v2 = vld [vmem:[#allocation21_spill] sm:$0xff]  ;;  %v3140_v52 = vld [vmem:[#allocation56_spill] sm:$0xff]  ;;  %v3142_v36 = vld [vmem:[#allocation30_spill] sm:$0xff] }
 0x20a   :  { %v1335_v44 = vsub.f32 %v1263_v14, %v2800_v10  ;;  %v615_v40 = vand.u32 2147483647, %v603_v20  ;;  %1568 = vrcp.f32 %v1247_v56  ;;  %v1331_v19 = vmul.f32 %v1561_v27, %v1295_v9  ;;  %v3131_v10 = vld [vmem:[#allocation19_spill] sm:$0xff]  ;;  %v3143_v56 = vld [vmem:[#allocation61_spill] sm:$0xff]  ;;  %v3145_v12 = vld [vmem:[#allocation62_spill] sm:$0xff] }
 0x20b   :  { %v635_v32 = vadd.f32 %v3122_v62, %v3121_v33  ;;  %v1354_v30 = vsub.f32 %v642_v55, %v1342_v57  ;;  %v3128_v31 = vsub.f32 %v3126_v16, %v3127_v6  ;;  %v529_v53 = vand.u32 2147483647, %v517_v28  ;;  %v3141_v28 = vld [vmem:[#allocation59_spill] sm:$0xff]  ;;  %v3147_v62 = vld [vmem:[#allocation65_spill] sm:$0xff] }
 0x20c   :  { %v1265_v22 = vmul.f32 %v1563_v51, %v2779_v45  ;;  %v355_v54 = vsub.f32 %v3129_v41, %v3127_v6  ;;  %v539_v24 = vadd.f32 %v527_v15, %v3130_v3  ;;  %v519_v61 = vsub.f32 %v3131_v10, %v3111_v0  ;;  %v3146_v34 = vld [vmem:[#allocation71_spill] sm:$0xff] }
 0x20d   :  { %v365_v48 = vand.u32 2147483647, %v3128_v31  ;;  %v1347_v39 = vsub.f32 %v635_v32, %v1335_v44  ;;  %v242_v63 = vmul.f32 0.6931472, %v3132_v23  ;;  %1366 = vst [vmem:[#allocation2 + $0x50] sm:$0xff] %v1354_v30  ;;  %v3136_v38 = vsub.f32 %v3134_v18, %v3135_v13 }
 0x20e   :  { %v617_v58 = vand.u32 2147483647, %v605_v37  ;;  %v1337_v45 = vsub.f32 %v1265_v22, %v2823_v5  ;;  %v3139_v4 = vsub.f32 %v3137_v11, %v3138_v2  ;;  %v262_v0 = vsub.f32 %v3141_v28, %v3140_v52  ;;  %v3144_v5 = vld [vmem:[#allocation60_spill] sm:$0xff] }
 0x20f   :  { %v453_v60 = vadd.f32 %v3133_v29, %v365_v48  ;;  %v637_v20 = vadd.f32 %v625_v42, %v3136_v38  ;;  %1359 = vst [vmem:[#allocation2 + $0x18] sm:$0xff] %v1347_v39  ;;  %v627_v47 = vadd.f32 %v615_v40, %v539_v24  ;;  %v607_v14 = vsub.f32 %v3142_v36, %v3032_v17  ;;  %v1565_v59 = vpop.eup %1564 }
 0x210   :  { %v443_v15 = vand.u32 2147483647, %v3139_v4  ;;  %v367_v50 = vand.u32 2147483647, %v355_v54  ;;  %v531_v55 = vand.u32 2147483647, %v519_v61  ;;  %v1267_v57 = vmul.f32 %v1565_v59, %v2819_v49 }
 0x211   :  { %v541_v43 = vadd.f32 %v529_v53, %v453_v60  ;;  %v1349_v26 = vsub.f32 %v637_v20, %v1337_v45  ;;  %v264_v9 = vsub.f32 %v3144_v5, %v3143_v56  ;;  %v194_v33 = vmul.f32 %v3146_v34, %v3145_v12 }
 0x212   :  { %v254_v32 = vmul.f32 %v242_v63, %v3147_v62  ;;  %v1567_v25 = vpop.eup %1566  ;;  %v455_v21 = vadd.f32 %v443_v15, %v367_v50  ;;  %v639_v17 = vadd.f32 %v627_v47, %v262_v0  ;;  %v619_v42 = vand.u32 2147483647, %v607_v14 }
 0x213   :  { %v629_v27 = vadd.f32 %v617_v58, %v541_v43  ;;  %1361 = vst [vmem:[#allocation2 + $0x28] sm:$0xff] %v1349_v26  ;;  %v1339_v35 = vsub.f32 %v1267_v57, %v2842_v7  ;;  %v1269_v37 = vmul.f32 %v1567_v25, %v2833_v1 }
 0x214   :  { %v543_v44 = vadd.f32 %v531_v55, %v455_v21  ;;  %v266_v30 = vsub.f32 %v254_v32, %v194_v33 }
 0x215   :  { %v1351_v49 = vsub.f32 %v639_v17, %v1339_v35  ;;  %v641_v51 = vadd.f32 %v629_v27, %v264_v9  ;;  %v1341_v40 = vsub.f32 %v1269_v37, %v2853_v46 }
 0x216   :  { %v631_v16 = vadd.f32 %v619_v42, %v543_v44 }
 0x217   :  { %1363 = vst [vmem:[#allocation2 + $0x38] sm:$0xff] %v1351_v49  ;;  %v1569_v6 = vpop.eup %1568  ;;  %v1353_v31 = vsub.f32 %v641_v51, %v1341_v40 }
 0x218   :  { %v1271_v48 = vmul.f32 %v1569_v6, %v2849_v8  ;;  %v643_v53 = vadd.f32 %v631_v16, %v266_v30 }
 0x219   :  { %1365 = vst [vmem:[#allocation2 + $0x48] sm:$0xff] %v1353_v31 }
 0x21a   :  { %v1343_v39 = vsub.f32 %v1271_v48, %v1331_v19 }
 0x21c   :  { %v1355_v7 = vsub.f32 %v643_v53, %v1343_v39 }
 0x21e   :  { %1367 = vst [vmem:[#allocation2 + $0x58] sm:$0xff] %v1355_v7 }
 0x21f   :  { %1582 = shalt.err (!%p1579_p4)
}
 0x220   :  { %s1604_s11 = smov 128   ;;  %s1605_s12 = smov 8  }
 0x221   :  { %1379 = dma.vmem_to_hbm [thread:$0]  %s1374_s9, 1536, %s2918_s3, [#allocation3], %s1604_s11, %s1604_s11, %s1605_s12  }
 0x222   :  { %1591 = dma.done.wait [#allocation3], 1536  }
 0x223   :  { %1592 = vsyncadd [#allocation3], 4294965760 }
 0x224   :  { %1383 = vsyncpa [#allocation3], 1 }

</bundles_post_ra>
